<compile_context>
chip_gen: v7x
topology: tpu7x:2x2x1
jax: 0.10.0
libtpu: 0.0.40
codegen_flags: <defaults>
</compile_context>

<pallas_src>
import jax
import jax.numpy as jnp
from jax import lax
from jax.experimental import pallas as pl
from jax.experimental.pallas import tpu as pltpu

LEAKY_SLOPE = 0.01  # nn.LeakyReLU default negative_slope


def _leaky_relu(x):
    return jnp.where(x >= 0, x, LEAKY_SLOPE * x)


def bonds_mlp_kernel(
    x_ref,                      # (TB, n_ipt)  compute dtype (bf16)
    w1_ref, b1_ref,             # (n_ipt, h1) bf16, (1, h1) f32   [normalization folded in]
    w2_ref, b2_ref,             # (h1, h2)   bf16, (1, h2) f32
    w3t_ref, b3t_ref,           # (n_opt, h2) bf16, (n_opt, 1) f32 [output scale folded in]
    omin_ref,                   # (n_opt, 1) f32
    o_ref,                      # (n_opt, TB) f32  -- lane-dense (batch on lanes)
):
    x = x_ref[...]

    # ---- Linear 1 + LeakyReLU (input normalization pre-folded into w1/b1) ----
    h1 = jnp.dot(x, w1_ref[...], preferred_element_type=jnp.float32) + b1_ref[...]
    h1 = _leaky_relu(h1).astype(x.dtype)

    # ---- Linear 2 + Dropout(eval: identity) + LeakyReLU ----
    # TODO(synk): Dropout is a no-op in inference; training-mode dropout not implemented.
    h2 = jnp.dot(h1, w2_ref[...], preferred_element_type=jnp.float32) + b2_ref[...]
    h2 = _leaky_relu(h2).astype(x.dtype)

    # ---- Linear 3, computed transposed so the result is (n_opt, TB) ----
    # Contract the feature axes of w3t (n_opt, h2) and h2 (TB, h2): the standard
    # "transposed-RHS" MXU pattern. Output scale (opt_max - opt_min) is already
    # folded into w3t/b3t.
    z_t = lax.dot_general(
        w3t_ref[...], h2,
        dimension_numbers=(((1,), (1,)), ((), ())),
        preferred_element_type=jnp.float32,
    )
    z_t = z_t + b3t_ref[...]

    # ---- clamp(min=0) then + opt_min (scale already applied; scale > 0) ----
    o_ref[...] = jnp.maximum(z_t, 0.0) + omin_ref[...]


def _fold_params(params, compute_dtype):
    """Fold input normalization into layer 1 and output denorm into layer 3."""
    ipt_min, ipt_max = params["ipt_min"], params["ipt_max"]
    opt_min, opt_max = params["opt_min"], params["opt_max"]
    w1, b1 = params["w1"], params["b1"]
    w2, b2 = params["w2"], params["b2"]
    w3, b3 = params["w3"], params["b3"]

    # (x - min) * inv @ w1 + b1  ==  x @ (inv[:,None] * w1) + (b1 - (min*inv) @ w1)
    inv_range = 1.0 / (ipt_max - ipt_min)            # (1, n_ipt)
    w1f = w1 * inv_range.reshape(-1, 1)              # (n_ipt, h1)
    b1f = b1 - (ipt_min * inv_range) @ w1            # (1, h1)

    # max(z, 0) * s + opt_min == max(z * s, 0) + opt_min   (requires s > 0,
    # which holds by construction: opt_max > opt_min).
    scale = opt_max - opt_min                        # (1, n_opt)
    w3f = w3 * scale                                 # (h2, n_opt)
    b3f = b3 * scale                                 # (1, n_opt)

    return dict(
        w1=w1f.astype(compute_dtype), b1=b1f.astype(jnp.float32),
        w2=w2.astype(compute_dtype),  b2=b2.astype(jnp.float32),
        w3t=w3f.T.astype(compute_dtype), b3t=b3f.T.astype(jnp.float32),
        omin=opt_min.T.astype(jnp.float32),
    )


def bonds_forward(x, params, *, tile_batch=512, compute_dtype=jnp.bfloat16):
    """Fused BondsNeuralNetwork forward pass.

    x: (B, n_ipt) float32. B must be divisible by the (possibly clipped)
    tile_batch, which must be a multiple of 8.

    Notes on sizing: weights are ~10 KB total, so VMEM only matters for very
    large tiles — on v5e cap tile_batch around 16K-32K rows (or raise
    vmem_limit_bytes in CompilerParams); on v6e/v7x anything reasonable fits.
    Keep the grid >= 2 steps so both v7x TensorCores get work.
    """
    B, n_ipt = x.shape
    tile_batch = min(tile_batch, B)
    assert tile_batch % 8 == 0 and B % tile_batch == 0, (B, tile_batch)
    n_opt = params["w3"].shape[1]

    fp = _fold_params(params, compute_dtype)
    xc = x.astype(compute_dtype)

    def full(arr):  # whole-array block, re-used (not re-fetched) every grid step
        return pl.BlockSpec(arr.shape, lambda i: (0, 0))

    in_specs = [
        pl.BlockSpec((tile_batch, n_ipt), lambda i: (i, 0)),   # x tile
        full(fp["w1"]), full(fp["b1"]),
        full(fp["w2"]), full(fp["b2"]),
        full(fp["w3t"]), full(fp["b3t"]),
        full(fp["omin"]),
    ]
    # Transposed, lane-dense output: (n_opt, B) with batch on the lane axis.
    out_spec = pl.BlockSpec((n_opt, tile_batch), lambda i: (0, i))

    out_t = pl.pallas_call(
        bonds_mlp_kernel,
        out_shape=jax.ShapeDtypeStruct((n_opt, B), jnp.float32),
        grid_spec=pltpu.PrefetchScalarGridSpec(
            num_scalar_prefetch=0,
            grid=(B // tile_batch,),
            in_specs=in_specs,
            out_specs=out_spec,
        ),
        compiler_params=pltpu.CompilerParams(
            dimension_semantics=("parallel",),
        ),
    )(xc, fp["w1"], fp["b1"], fp["w2"], fp["b2"],
      fp["w3t"], fp["b3t"], fp["omin"])

    return out_t.T  # (B, n_opt); tiny wrapper-side transpose of the lane-dense result


def init_params(key, multiplier=4, hidden1_features=8, hidden2_features=8):
    """Deterministic synthetic parameters matching the module's shapes."""
    n_ipt = 9 * multiplier
    h1 = hidden1_features * multiplier
    h2 = hidden2_features * multiplier
    n_opt = 1 * multiplier

    ks = jax.random.split(key, 10)

    def linear(kw, kb, fan_in, fan_out):
        # PyTorch nn.Linear default init: U(-1/sqrt(fan_in), 1/sqrt(fan_in)).
        bound = 1.0 / jnp.sqrt(jnp.float32(fan_in))
        w = jax.random.uniform(kw, (fan_in, fan_out), jnp.float32, -bound, bound)
        b = jax.random.uniform(kb, (1, fan_out), jnp.float32, -bound, bound)
        return w, b

    w1, b1 = linear(ks[0], ks[1], n_ipt, h1)
    w2, b2 = linear(ks[2], ks[3], h1, h2)
    w3, b3 = linear(ks[4], ks[5], h2, n_opt)

    # Normalization buffers: in the real module they are filled from training
    # data; use deterministic finite synthetic values with max > min.
    ipt_min = -jnp.abs(jax.random.normal(ks[6], (1, n_ipt), jnp.float32)) - 0.5
    ipt_max = jnp.abs(jax.random.normal(ks[7], (1, n_ipt), jnp.float32)) + 0.5
    opt_min = -jnp.abs(jax.random.normal(ks[8], (1, n_opt), jnp.float32)) - 0.5
    opt_max = jnp.abs(jax.random.normal(ks[9], (1, n_opt), jnp.float32)) + 0.5

    return dict(
        w1=w1, b1=b1, w2=w2, b2=b2, w3=w3, b3=b3,
        ipt_min=ipt_min, ipt_max=ipt_max, opt_min=opt_min, opt_max=opt_max,
    )


def reference_forward(x, p):
    """Pure-JAX f32 reference of the PyTorch forward (eval mode)."""
    xn = (x - p["ipt_min"]) / (p["ipt_max"] - p["ipt_min"])
    h1 = _leaky_relu(xn @ p["w1"] + p["b1"])
    h2 = _leaky_relu(h1 @ p["w2"] + p["b2"])
    y = h2 @ p["w3"] + p["b3"]
    y = jnp.maximum(y, 0.0)
    return y * (p["opt_max"] - p["opt_min"]) + p["opt_min"]


def reference_forward_matched(x, p, compute_dtype=jnp.bfloat16):
    """Pure-JAX reference with the same folding + bf16 casts as the kernel."""
    fp = _fold_params(p, compute_dtype)
    xc = x.astype(compute_dtype)
    h1 = _leaky_relu(jnp.dot(xc, fp["w1"], preferred_element_type=jnp.float32)
                     + fp["b1"]).astype(compute_dtype)
    h2 = _leaky_relu(jnp.dot(h1, fp["w2"], preferred_element_type=jnp.float32)
                     + fp["b2"]).astype(compute_dtype)
    z_t = lax.dot_general(fp["w3t"], h2, (((1,), (1,)), ((), ())),
                          preferred_element_type=jnp.float32) + fp["b3t"]
    return (jnp.maximum(z_t, 0.0) + fp["omin"]).T


if __name__ == "__main__":
    key = jax.random.PRNGKey(0)
    k_params, k_x = jax.random.split(key)

    multiplier = 4                       # n_ipt=36, hidden1=32, hidden2=32, n_opt=4
    params = init_params(k_params, multiplier=multiplier,
                         hidden1_features=8, hidden2_features=8)

    B = 1024                             # -> 2 parallel grid steps at tile_batch=512
    n_ipt = 9 * multiplier
    x = jax.random.normal(k_x, (B, n_ipt), jnp.float32)

    out = bonds_forward(x, params, tile_batch=512)
    out = jax.block_until_ready(out)
    assert out.shape == (B, multiplier)

    # Tight check against a reference using the kernel's exact numerics.
    ref_matched = reference_forward_matched(x, params)
    assert jnp.allclose(out, ref_matched, atol=1e-2, rtol=1e-2), \
        "mismatch vs bf16-matched reference"

    # Loose sanity check against the full-precision module reference
    # (bf16 matmul operands introduce small deviations).
    ref_f32 = reference_forward(x, params)
    assert float(jnp.max(jnp.abs(out - ref_f32))) < 0.25, \
        "excessive deviation vs f32 reference"

    print("KERNEL_OK")
</pallas_src>

<mosaic_0001>
module attributes {stable_mosaic.version = 11 : i64} {
  func.func @bonds_mlp_kernel(%arg0: i32, %arg1: memref<512x36xbf16, #tpu.memory_space<vmem>>, %arg2: memref<36x32xbf16, #tpu.memory_space<vmem>>, %arg3: memref<1x32xf32, #tpu.memory_space<vmem>>, %arg4: memref<32x32xbf16, #tpu.memory_space<vmem>>, %arg5: memref<1x32xf32, #tpu.memory_space<vmem>>, %arg6: memref<4x32xbf16, #tpu.memory_space<vmem>>, %arg7: memref<4x1xf32, #tpu.memory_space<vmem>>, %arg8: memref<4x1xf32, #tpu.memory_space<vmem>>, %arg9: memref<4x512xf32, #tpu.memory_space<vmem>>) attributes {dimension_semantics = [#tpu.dimension_semantics<parallel>], iteration_bounds = array<i64: 2>, scalar_prefetch = 0 : i64, scratch_operands = 0 : i64, tpu.core_type = #tpu.core_type<tc>, window_params = [{transform_indices = @transform_0, window_bounds = array<i64: 512, 36>}, {pipeline_mode = #tpu.pipeline_mode<synchronous>, transform_indices = @transform_1, window_bounds = array<i64: 36, 32>}, {pipeline_mode = #tpu.pipeline_mode<synchronous>, transform_indices = @transform_2, window_bounds = array<i64: 1, 32>}, {pipeline_mode = #tpu.pipeline_mode<synchronous>, transform_indices = @transform_3, window_bounds = array<i64: 32, 32>}, {pipeline_mode = #tpu.pipeline_mode<synchronous>, transform_indices = @transform_4, window_bounds = array<i64: 1, 32>}, {pipeline_mode = #tpu.pipeline_mode<synchronous>, transform_indices = @transform_5, window_bounds = array<i64: 4, 32>}, {pipeline_mode = #tpu.pipeline_mode<synchronous>, transform_indices = @transform_6, window_bounds = array<i64: 4, 1>}, {pipeline_mode = #tpu.pipeline_mode<synchronous>, transform_indices = @transform_7, window_bounds = array<i64: 4, 1>}, {transform_indices = @transform_8, window_bounds = array<i64: 4, 512>}]} {
    %c0 = arith.constant 0 : index
    %c0_0 = arith.constant 0 : index
    %0 = vector.load %arg1[%c0, %c0_0] : memref<512x36xbf16, #tpu.memory_space<vmem>>, vector<512x36xbf16>
    %c0_1 = arith.constant 0 : index
    %c0_2 = arith.constant 0 : index
    %1 = vector.load %arg2[%c0_1, %c0_2] : memref<36x32xbf16, #tpu.memory_space<vmem>>, vector<36x32xbf16>
    %cst = arith.constant dense<0.000000e+00> : vector<512x32xf32>
    %2 = tpu.matmul %0, %1, %cst {dimension_numbers = #tpu.dot_dimension_numbers<[1], [0], [0], [1], [0, 0, 1, 1], [], []>} : vector<512x36xbf16>, vector<36x32xbf16>, vector<512x32xf32> -> vector<512x32xf32>
    %c0_3 = arith.constant 0 : index
    %c0_4 = arith.constant 0 : index
    %3 = vector.load %arg3[%c0_3, %c0_4] : memref<1x32xf32, #tpu.memory_space<vmem>>, vector<1x32xf32>
    %4 = vector.broadcast %3 : vector<1x32xf32> to vector<512x32xf32>
    %5 = arith.addf %2, %4 : vector<512x32xf32>
    %cst_5 = arith.constant 0.000000e+00 : f32
    %6 = vector.broadcast %cst_5 : f32 to vector<512x32xf32>
    %7 = arith.cmpf oge, %5, %6 : vector<512x32xf32>
    %cst_6 = arith.constant 0.00999999977 : f32
    %8 = vector.broadcast %cst_6 : f32 to vector<512x32xf32>
    %9 = arith.mulf %8, %5 : vector<512x32xf32>
    %10 = arith.select %7, %5, %9 : vector<512x32xi1>, vector<512x32xf32>
    %11 = arith.truncf %10 : vector<512x32xf32> to vector<512x32xbf16>
    %c0_7 = arith.constant 0 : index
    %c0_8 = arith.constant 0 : index
    %12 = vector.load %arg4[%c0_7, %c0_8] : memref<32x32xbf16, #tpu.memory_space<vmem>>, vector<32x32xbf16>
    %cst_9 = arith.constant dense<0.000000e+00> : vector<512x32xf32>
    %13 = tpu.matmul %11, %12, %cst_9 {dimension_numbers = #tpu.dot_dimension_numbers<[1], [0], [0], [1], [0, 0, 1, 1], [], []>} : vector<512x32xbf16>, vector<32x32xbf16>, vector<512x32xf32> -> vector<512x32xf32>
    %c0_10 = arith.constant 0 : index
    %c0_11 = arith.constant 0 : index
    %14 = vector.load %arg5[%c0_10, %c0_11] : memref<1x32xf32, #tpu.memory_space<vmem>>, vector<1x32xf32>
    %15 = vector.broadcast %14 : vector<1x32xf32> to vector<512x32xf32>
    %16 = arith.addf %13, %15 : vector<512x32xf32>
    %cst_12 = arith.constant 0.000000e+00 : f32
    %17 = vector.broadcast %cst_12 : f32 to vector<512x32xf32>
    %18 = arith.cmpf oge, %16, %17 : vector<512x32xf32>
    %cst_13 = arith.constant 0.00999999977 : f32
    %19 = vector.broadcast %cst_13 : f32 to vector<512x32xf32>
    %20 = arith.mulf %19, %16 : vector<512x32xf32>
    %21 = arith.select %18, %16, %20 : vector<512x32xi1>, vector<512x32xf32>
    %22 = arith.truncf %21 : vector<512x32xf32> to vector<512x32xbf16>
    %c0_14 = arith.constant 0 : index
    %c0_15 = arith.constant 0 : index
    %23 = vector.load %arg6[%c0_14, %c0_15] : memref<4x32xbf16, #tpu.memory_space<vmem>>, vector<4x32xbf16>
    %cst_16 = arith.constant dense<0.000000e+00> : vector<4x512xf32>
    %24 = tpu.matmul %23, %22, %cst_16 {dimension_numbers = #tpu.dot_dimension_numbers<[1], [1], [0], [0], [0, 0, 1, 0], [], []>} : vector<4x32xbf16>, vector<512x32xbf16>, vector<4x512xf32> -> vector<4x512xf32>
    %c0_17 = arith.constant 0 : index
    %c0_18 = arith.constant 0 : index
    %25 = vector.load %arg7[%c0_17, %c0_18] : memref<4x1xf32, #tpu.memory_space<vmem>>, vector<4x1xf32>
    %26 = vector.broadcast %25 : vector<4x1xf32> to vector<4x512xf32>
    %27 = arith.addf %24, %26 : vector<4x512xf32>
    %cst_19 = arith.constant 0.000000e+00 : f32
    %28 = vector.broadcast %cst_19 : f32 to vector<4x512xf32>
    %29 = arith.maximumf %27, %28 : vector<4x512xf32>
    %c0_20 = arith.constant 0 : index
    %c0_21 = arith.constant 0 : index
    %30 = vector.load %arg8[%c0_20, %c0_21] : memref<4x1xf32, #tpu.memory_space<vmem>>, vector<4x1xf32>
    %31 = vector.broadcast %30 : vector<4x1xf32> to vector<4x512xf32>
    %32 = arith.addf %29, %31 : vector<4x512xf32>
    %c0_22 = arith.constant 0 : index
    %c0_23 = arith.constant 0 : index
    %33 = vector.load %arg9[%c0_22, %c0_23] : memref<4x512xf32, #tpu.memory_space<vmem>>, vector<4x512xf32>
    tpu.vector_store %arg9[%c0_22, %c0_23], %32 {strides = array<i32>} : memref<4x512xf32, #tpu.memory_space<vmem>>, vector<4x512xf32>,
    return
  }
  func.func @transform_0(%arg0: i32) -> (i32, i32) {
    %c0_i32 = arith.constant 0 : i32
    %c0_i32_0 = arith.constant 0 : i32
    return %arg0, %c0_i32 : i32, i32
  }
  func.func @transform_1(%arg0: i32) -> (i32, i32) {
    %c0_i32 = arith.constant 0 : i32
    %c0_i32_0 = arith.constant 0 : i32
    %c0_i32_1 = arith.constant 0 : i32
    return %c0_i32, %c0_i32_0 : i32, i32
  }
  func.func @transform_2(%arg0: i32) -> (i32, i32) {
    %c0_i32 = arith.constant 0 : i32
    %c0_i32_0 = arith.constant 0 : i32
    %c0_i32_1 = arith.constant 0 : i32
    return %c0_i32, %c0_i32_0 : i32, i32
  }
  func.func @transform_3(%arg0: i32) -> (i32, i32) {
    %c0_i32 = arith.constant 0 : i32
    %c0_i32_0 = arith.constant 0 : i32
    %c0_i32_1 = arith.constant 0 : i32
    return %c0_i32, %c0_i32_0 : i32, i32
  }
  func.func @transform_4(%arg0: i32) -> (i32, i32) {
    %c0_i32 = arith.constant 0 : i32
    %c0_i32_0 = arith.constant 0 : i32
    %c0_i32_1 = arith.constant 0 : i32
    return %c0_i32, %c0_i32_0 : i32, i32
  }
  func.func @transform_5(%arg0: i32) -> (i32, i32) {
    %c0_i32 = arith.constant 0 : i32
    %c0_i32_0 = arith.constant 0 : i32
    %c0_i32_1 = arith.constant 0 : i32
    return %c0_i32, %c0_i32_0 : i32, i32
  }
  func.func @transform_6(%arg0: i32) -> (i32, i32) {
    %c0_i32 = arith.constant 0 : i32
    %c0_i32_0 = arith.constant 0 : i32
    %c0_i32_1 = arith.constant 0 : i32
    return %c0_i32, %c0_i32_0 : i32, i32
  }
  func.func @transform_7(%arg0: i32) -> (i32, i32) {
    %c0_i32 = arith.constant 0 : i32
    %c0_i32_0 = arith.constant 0 : i32
    %c0_i32_1 = arith.constant 0 : i32
    return %c0_i32, %c0_i32_0 : i32, i32
  }
  func.func @transform_8(%arg0: i32) -> (i32, i32) {
    %c0_i32 = arith.constant 0 : i32
    %c0_i32_0 = arith.constant 0 : i32
    return %c0_i32, %arg0 : i32, i32
  }
}

</mosaic_0001>

<bundles_post_ra>
// kernel: tpu_custom_call.1
= control target key start
LH: loop header
LB: loop body
LE: loop exit
PB: predicated region body
PF: predicated region fallthrough
CT: control target
= control target key end

     0   :  { %13 = vsyncpa [#allocation3], 0  ;;  %s3231_s0 = inlined_call_operand.vmem [shape: bf16[1024,36], index: 0, kind: input, shape index: {}]   ;;  %s3232_s1 = inlined_call_operand.vmem [shape: bf16[36,32], index: 1, kind: input, shape index: {}]   ;;  %s3233_s2 = inlined_call_operand.vmem [shape: f32[1,32], index: 2, kind: input, shape index: {}]   ;;  %s3234_s3 = inlined_call_operand.vmem [shape: bf16[32,32], index: 3, kind: input, shape index: {}]   ;;  %s3235_s4 = inlined_call_operand.vmem [shape: f32[1,32], index: 4, kind: input, shape index: {}]   ;;  %s3236_s5 = inlined_call_operand.vmem [shape: bf16[4,32], index: 5, kind: input, shape index: {}]   ;;  %s3237_s6 = inlined_call_operand.vmem [shape: f32[4,1], index: 6, kind: input, shape index: {}]   ;;  %s3238_s7 = inlined_call_operand.vmem [shape: f32[4,1], index: 7, kind: input, shape index: {}]   ;;  %s3239_s8 = inlined_call_operand.hbm [shape: f32[4,1024], index: 8, kind: output, shape index: {}]  }
   0x1   :  { %15 = vsyncpa [#allocation3 + $0x1], 0  ;;  %s2659_s27 = smov 0   ;;  %s2661_s28 = smov 0  }
   0x2   :  { %s2663_s29 = smov 0   ;;  %s2665_s30 = smov 0  }
   0x3 LB: > { %s2680_s9 = sadd.s32 4294967295, %s2610_s30   ;;  %s2092_s10 = sadd.s32 4294967294, %s2610_s30   ;;  %s2610_s30 = sphi %s2665_s30, %s3245_s30   ;;  %s2606_s29 = sphi %s2663_s29, %s3244_s29   ;;  %s2602_s28 = sphi %s2661_s28, %s3243_s28   ;;  %s2598_s27 = sphi %s2659_s27, %s3242_s27  }
   0x4   : > { %s2684_s11 = sadd.s32 1, %s2610_s30   ;;  %s201_s12 = sadd.s32 1, %s2606_s29 }
   0x5   : > { %s198_s13 = ssub.s32 %s2610_s30, %s2684_s11  ;;  %p211_p0 = scmp.ne.s32.totalorder %s2606_s29, %s2602_s28 }
   0x6   : > { %p199_p1 = scmp.eq.s32.totalorder %s198_s13, 0  ;;  %p212_p2 = scmp.eq.s32.totalorder %s2680_s9, 1 }
   0x7   : > { %p217_p3 = scmp.ne.s32.totalorder %s2602_s28, %s2598_s27  ;;  %p218_p4 = scmp.eq.s32.totalorder %s2092_s10, 1 }
   0x8   : > { %s2695_s14 = scalar_select %p199_p1, %s2606_s29, %s201_s12  }
   0x9   : > { %p2697_p5 = por %p212_p2, %p211_p0  ;;  %p2701_p6 = por %p218_p4, %p217_p3 }
   0xa   : > { %p2095_p7 = scmp.ge.s32.totalorder %s2610_s30, 1  ;;  %p266_p8 = scmp.lt.s32.totalorder %s2610_s30, 3 }
   0xc   : > { %p267_p9 = pnand %p2095_p7, %p266_p8 }
   0xd   : > { %v2511_v0 = vld [vmem:[%s3232_s1] sm:$0xff] (!%p267_p9)   ;;  %v2512_v1 = vld [vmem:[%s3232_s1 + $0x8] sm:$0xff] (!%p267_p9)   ;;  %s2097_s21 = sshll.u32 (!%p267_p9), %s2680_s9, 6  ;;  %v2513_v2 = vld [vmem:[%s3232_s1 + $0x10] ss:$0 sps:$4 sm:$0x33] (!%p267_p9)  }
   0xe   : > { %270 = sbr.rel (%p267_p9) target bundleno = 866 (0x362), region = 52  ;;  %2315 = vmatprep.subr.bf16.mxu0 (!%p267_p9), %v2511_v0  ;;  %p301_p10 = scmp.lt.s32.totalorder (!%p267_p9), %s2097_s21, 127  ;;  %vm656_vm0 = vcmask (!%p267_p9), 1041408   ;;  %vm559_vm1 = vcmask (!%p267_p9), 293888   ;;  %v2546_v29 = vld [vmem:[%s3234_s3] sm:$0xff] (!%p267_p9)   ;;  %v2547_v30 = vld [vmem:[%s3234_s3 + $0x8] sm:$0xff] (!%p267_p9)  }
   0xf   : > { %2316 = vmatpush3.bf16.msra.mxu0 (!%p267_p9), %v2511_v0  ;;  %v658_v3 = vsel (!%p267_p9), %vm656_vm0, %v2513_v2, 0  ;;  %2385 = vmatprep.subr.bf16.mxu1 (!%p267_p9), %v2546_v29  ;;  %v2795_v38 = vld [vmem:[%s3233_s2] ss:$0 sm:$0xff] (!%p267_p9)  ;;  %vm1196_vm6 = vcmask (!%p267_p9), 261120   ;;  %s297_s13 = sand.u32 (!%p267_p9), 1, %s2602_s28   ;;  %s2209_s19 = sshll.u32 (!%p267_p9), %s2680_s9, 8 }
  0x10   : > { %2317 = vmatprep.subr.bf16.mxu0 (!%p267_p9), %v2512_v1  ;;  %2386 = vmatpush3.bf16.msra.mxu1 (!%p267_p9), %v2546_v29  ;;  %s2096_s17 = sshll.u32 (!%p267_p9), %s297_s13, 4  ;;  %s3189_s23 = scalar_lea.hbm (!%p267_p9), %s3239_s8, %s2209_s19 }
  0x11   : > { %2387 = vmatprep.subr.bf16.mxu1 (!%p267_p9), %v2547_v30  ;;  %s299_s18 = scalar_lea.vmem (!%p267_p9), [#allocation2], %s2096_s17  ;;  %s2613_s9 = smov (!%p267_p9), [#allocation2]  }
  0x12   : > { %s2033_s20 = sshll.u32 (!%p267_p9), %s299_s18, 4  ;;  %s2552_s26 = sshll.u32 (!%p267_p9), %s2613_s9, 4  ;;  %s3191_s20 = int_to_ptr.vmem [resolvable:$true] %s2033_s20  ;;  %s2553_s26 = int_to_ptr.vmem [resolvable:$false] %s2552_s26 }
  0x13   : > { %2318 = vmatpush3.bf16.msra.mxu0 (!%p267_p9), %v2512_v1  ;;  %s2548_s25 = scalar_lea.vmem (!%p267_p9), %s3191_s20, 256  ;;  %p2555_p0 = scmp.lt.s32.totalorder (!%p267_p9), %s3191_s20, %s2553_s26 }
  0x14   : > { %2453 = vmatprep.subr.msk.bf16.mxu0 (!%p267_p9), %vm656_vm0, %v2513_v2  ;;  %2388 = vmatpush3.bf16.msra.mxu1 (!%p267_p9), %v2547_v30  ;;  %p2549_p11 = scmp.ne.s32.totalorder (!%p267_p9), %s3191_s20, %s2548_s25 }
  0x15   : > { %s3247_s21 = smov (!%p301_p10, %s2097_s21), 127 }
  0x16   : > { %s2098_s24 = sshll.u32 %s3247_s21, 2  ;;  %p2550_p12 = pnand %p2549_p11, %p2697_p5 }
  0x17   : > { %s2720_s10 = scalar_lea.vmem %s3231_s0, %s2098_s24  ;;  %2320 = vmatpush3.bf16.msra.mxu0 %v658_v3  ;;  %s2019_s24 = scalar_lea.sflag [#allocation3], %s297_s13 }
  0x18   : > { %v2514_v4 = vld [vmem:[%s2720_s10] sm:$0xff]   ;;  %v2515_v5 = vld [vmem:[%s2720_s10 + $0x8] sm:$0xff]   ;;  %v2516_v6 = vld [vmem:[%s2720_s10 + $0x10] sm:$0xff]   ;;  %p2551_p13 = pneg %p2550_p12 }
  0x19   : > { %2321 = vmatprep.mubr.msk.bf16.mxu0 %vm559_vm1, %v2514_v4  ;;  %v2517_v7 = vld [vmem:[%s2720_s10 + $0x18] sm:$0xff]   ;;  %v2518_v8 = vld [vmem:[%s2720_s10 + $0x20] sm:$0xff]   ;;  %v2519_v9 = vld [vmem:[%s2720_s10 + $0x28] sm:$0xff]  }
  0x1a   : > { %2322 = vmatmul.mubr.msk.bf16.vlgmr.msra.gmra.mrb[0].mxu0 %vm559_vm1, %v2515_v5  ;;  %v2520_v10 = vld [vmem:[%s2720_s10 + $0x30] sm:$0xff]   ;;  %v2521_v11 = vld [vmem:[%s2720_s10 + $0x38] sm:$0xff]   ;;  %v2522_v12 = vld [vmem:[%s2720_s10 + $0x40] sm:$0xff]  }
  0x1b   : > { %2325 = vmatprep.mubr.msk.bf16.mxu0 %vm559_vm1, %v2516_v6  ;;  %v2523_v13 = vld [vmem:[%s2720_s10 + $0x48] sm:$0xff]   ;;  %v2524_v14 = vld [vmem:[%s2720_s10 + $0x50] sm:$0xff]   ;;  %v2525_v15 = vld [vmem:[%s2720_s10 + $0x58] sm:$0xff]  }
  0x1c   : > { %v2526_v16 = vld [vmem:[%s2720_s10 + $0x60] sm:$0xff]   ;;  %v2527_v17 = vld [vmem:[%s2720_s10 + $0x68] sm:$0xff]   ;;  %v2528_v18 = vld [vmem:[%s2720_s10 + $0x70] sm:$0xff]  }
  0x1d   : > { %v2529_v19 = vld [vmem:[%s2720_s10 + $0x78] sm:$0xff]   ;;  %v2530_v20 = vld [vmem:[%s2720_s10 + $0x80] sm:$0xff]   ;;  %v2531_v21 = vld [vmem:[%s2720_s10 + $0x88] sm:$0xff]  }
  0x1e   : > { %v2532_v22 = vld [vmem:[%s2720_s10 + $0x90] sm:$0xff]   ;;  %v2533_v23 = vld [vmem:[%s2720_s10 + $0x98] sm:$0xff]   ;;  %v2534_v24 = vld [vmem:[%s2720_s10 + $0xa0] sm:$0xff]  }
  0x1f   : > { %v2535_v25 = vld [vmem:[%s2720_s10 + $0xa8] sm:$0xff]   ;;  %v2536_v26 = vld [vmem:[%s2720_s10 + $0xb0] sm:$0xff]   ;;  %v2537_v27 = vld [vmem:[%s2720_s10 + $0xb8] sm:$0xff]  }
  0x20   : > { %v2538_v28 = vld [vmem:[%s2720_s10 + $0xc0] sm:$0xff]   ;;  %v2539_v31 = vld [vmem:[%s2720_s10 + $0xc8] sm:$0xff]   ;;  %v2540_v32 = vld [vmem:[%s2720_s10 + $0xd0] sm:$0xff]  }
  0x21   : > { %v2541_v33 = vld [vmem:[%s2720_s10 + $0xd8] sm:$0xff]   ;;  %v2542_v34 = vld [vmem:[%s2720_s10 + $0xe0] sm:$0xff]   ;;  %v2543_v35 = vld [vmem:[%s2720_s10 + $0xe8] sm:$0xff]  }
  0x22   : > { %2326 = vmatmul.mubr.msk.bf16.gmra.mrb[4].mxu0 %vm559_vm1, %v2517_v7  ;;  %v2544_v36 = vld [vmem:[%s2720_s10 + $0xf0] sm:$0xff]   ;;  %v2545_v37 = vld [vmem:[%s2720_s10 + $0xf8] sm:$0xff]   ;;  %s2554_s10 = scalar_lea.vmem %s2553_s26, 512 }
  0x23   : > { %2329 = vmatprep.mubr.msk.bf16.mxu0 %vm559_vm1, %v2518_v8  ;;  %p2556_p1 = scmp.lt.s32.totalorder %s2554_s10, %s2548_s25 }
  0x25   : > { %p2557_p2 = por %p2556_p1, %p2555_p0 }
  0x27   : > { %p2558_p3 = pnand %p2557_p2, %p2551_p13 }
  0x2a   : > { %2330 = vmatmul.mubr.msk.bf16.gmra.mrb[8].mxu0 %vm559_vm1, %v2519_v9 }
  0x2b   : > { %2333 = vmatprep.mubr.msk.bf16.mxu0 %vm559_vm1, %v2520_v10 }
  0x32   : > { %2334 = vmatmul.mubr.msk.bf16.gmra.mrb[12].mxu0 %vm559_vm1, %v2521_v11 }
  0x33   : > { %2337 = vmatprep.mubr.msk.bf16.mxu0 %vm559_vm1, %v2522_v12 }
  0x3a   : > { %2338 = vmatmul.mubr.msk.bf16.gmra.mrb[16].mxu0 %vm559_vm1, %v2523_v13 }
  0x3b   : > { %2341 = vmatprep.mubr.msk.bf16.mxu0 %vm559_vm1, %v2524_v14 }
  0x42   : > { %2342 = vmatmul.mubr.msk.bf16.gmra.mrb[20].mxu0 %vm559_vm1, %v2525_v15 }
  0x43   : > { %2345 = vmatprep.mubr.msk.bf16.mxu0 %vm559_vm1, %v2526_v16 }
  0x4a   : > { %2346 = vmatmul.mubr.msk.bf16.gmra.mrb[24].mxu0 %vm559_vm1, %v2527_v17 }
  0x4b   : > { %2349 = vmatprep.mubr.msk.bf16.mxu0 %vm559_vm1, %v2528_v18 }
  0x52   : > { %2350 = vmatmul.mubr.msk.bf16.gmra.mrb[28].mxu0 %vm559_vm1, %v2529_v19 }
  0x53   : > { %2353 = vmatprep.mubr.msk.bf16.mxu0 %vm559_vm1, %v2530_v20 }
  0x5a   : > { %2354 = vmatmul.mubr.msk.bf16.gmra.mrb[32].mxu0 %vm559_vm1, %v2531_v21 }
  0x5b   : > { %2357 = vmatprep.mubr.msk.bf16.mxu0 %vm559_vm1, %v2532_v22 }
  0x62   : > { %2358 = vmatmul.mubr.msk.bf16.gmra.mrb[36].mxu0 %vm559_vm1, %v2533_v23 }
  0x63   : > { %2361 = vmatprep.mubr.msk.bf16.mxu0 %vm559_vm1, %v2534_v24 }
  0x6a   : > { %2362 = vmatmul.mubr.msk.bf16.gmra.mrb[40].mxu0 %vm559_vm1, %v2535_v25 }
  0x6b   : > { %2365 = vmatprep.mubr.msk.bf16.mxu0 %vm559_vm1, %v2536_v26 }
  0x72   : > { %2366 = vmatmul.mubr.msk.bf16.gmra.mrb[44].mxu0 %vm559_vm1, %v2537_v27 }
  0x73   : > { %2369 = vmatprep.mubr.msk.bf16.mxu0 %vm559_vm1, %v2538_v28 }
  0x7a   : > { %2370 = vmatmul.mubr.msk.bf16.gmra.mrb[48].mxu0 %vm559_vm1, %v2539_v31 }
  0x7b   : > { %2373 = vmatprep.mubr.msk.bf16.mxu0 %vm559_vm1, %v2540_v32 }
  0x82   : > { %2374 = vmatmul.mubr.msk.bf16.gmra.mrb[52].mxu0 %vm559_vm1, %v2541_v33 }
  0x83   : > { %2377 = vmatprep.mubr.msk.bf16.mxu0 %vm559_vm1, %v2542_v34 }
  0x8a   : > { %2378 = vmatmul.mubr.msk.bf16.gmra.mrb[56].mxu0 %vm559_vm1, %v2543_v35 }
  0x8b   : > { %2381 = vmatprep.mubr.msk.bf16.mxu0 %vm559_vm1, %v2544_v36 }
  0x92   : > { %2382 = vmatmul.mubr.msk.bf16.gmra.mrb[60].mxu0 %vm559_vm1, %v2545_v37 }
  0xed   : > { %v2323_v39 = vpop.f32.mrb[0].mxu0 }
  0xee   : > { %v703_v40 = vadd.f32 %v2323_v39, %v2795_v38  ;;  %v694_v41 = vpop.f32.mrb[1].mxu0 }
  0xef   : > { %v695_v42 = vadd.f32 %v2795_v38, %v694_v41  ;;  %v2324_v43 = vpop.f32.mrb[2].mxu0 }
  0xf0   : > { %v1015_v44 = vmul.f32 0.01, %v703_v40  ;;  %v706_v45 = vadd.f32 %v2324_v43, %v2795_v38  ;;  %v697_v46 = vpop.f32.mrb[3].mxu0  ;;  %vm951_vm2 = vcmp.ge.f32.partialorder %v703_v40, 0.0 }
  0xf1   : > { %v1013_v47 = vmul.f32 0.01, %v695_v42  ;;  %v698_v48 = vadd.f32 %v2795_v38, %v697_v46  ;;  %vm949_vm4 = vcmp.ge.f32.partialorder %v695_v42, 0.0 }
  0xf2   : > { %vm952_vm3 = vcmp.ge.f32.partialorder %v706_v45, 0.0  ;;  %v1016_v49 = vmul.f32 0.01, %v706_v45  ;;  %v1079_v51 = vsel %vm951_vm2, %v703_v40, %v1015_v44 }
  0xf3   : > { %v1014_v50 = vmul.f32 0.01, %v698_v48  ;;  %vm950_vm5 = vcmp.ge.f32.partialorder %v698_v48, 0.0  ;;  %v1077_v55 = vsel %vm949_vm4, %v695_v42, %v1013_v47 }
  0xf4   : > { %v1080_v52 = vsel %vm952_vm3, %v706_v45, %v1016_v49 }
  0xf5   : > { %v1142_v53 = vpack.c.bf16 %v1080_v52, %v1079_v51  ;;  %v2327_v54 = vpop.f32.mrb[4].mxu0  ;;  %v1078_v56 = vsel %vm950_vm5, %v698_v48, %v1014_v50 }
  0xf6   : > { %v719_v57 = vadd.f32 %v2327_v54, %v2795_v38  ;;  %v710_v58 = vpop.f32.mrb[5].mxu0  ;;  %v1141_v59 = vpack.c.bf16 %v1078_v56, %v1077_v55 }
  0xf7   : > { %v711_v60 = vadd.f32 %v2795_v38, %v710_v58  ;;  %v2328_v61 = vpop.f32.mrb[6].mxu0 }
  0xf8   : > { %v1019_v62 = vmul.f32 0.01, %v719_v57  ;;  %v722_v63 = vadd.f32 %v2328_v61, %v2795_v38  ;;  %v713_v0 = vpop.f32.mrb[7].mxu0  ;;  %2389 = vmatprep.mubr.msk.bf16.mxu1 %vm1196_vm6, %v1141_v59  ;;  %vm955_vm7 = vcmp.ge.f32.partialorder %v719_v57, 0.0 }
  0xf9   : > { %v1017_v1 = vmul.f32 0.01, %v711_v60  ;;  %v714_v2 = vadd.f32 %v2795_v38, %v713_v0  ;;  %2390 = vmatmul.mubr.msk.bf16.vlgmr.msra.gmra.mrb[0].mxu1 %vm1196_vm6, %v1142_v53  ;;  %vm953_vm8 = vcmp.ge.f32.partialorder %v711_v60, 0.0 }
  0xfa   : > { %vm956_vm9 = vcmp.ge.f32.partialorder %v722_v63, 0.0  ;;  %v1020_v3 = vmul.f32 0.01, %v722_v63  ;;  %v1083_v5 = vsel %vm955_vm7, %v719_v57, %v1019_v62 }
  0xfb   : > { %vm954_vm10 = vcmp.ge.f32.partialorder %v714_v2, 0.0  ;;  %v1018_v4 = vmul.f32 0.01, %v714_v2  ;;  %v1081_v7 = vsel %vm953_vm8, %v711_v60, %v1017_v1 }
  0xfc   : > { %v1084_v6 = vsel %vm956_vm9, %v722_v63, %v1020_v3 }
  0xfd   : > { %v1144_v8 = vpack.c.bf16 %v1084_v6, %v1083_v5  ;;  %v1082_v9 = vsel %vm954_vm10, %v714_v2, %v1018_v4  ;;  %v2331_v10 = vpop.f32.mrb[8].mxu0 }
  0xfe   : > { %v1143_v11 = vpack.c.bf16 %v1082_v9, %v1081_v7  ;;  %v735_v12 = vadd.f32 %v2331_v10, %v2795_v38  ;;  %v726_v13 = vpop.f32.mrb[9].mxu0 }
  0xff   : > { %v727_v14 = vadd.f32 %v2795_v38, %v726_v13  ;;  %v2332_v15 = vpop.f32.mrb[10].mxu0 }
 0x100   : > { %v1023_v16 = vmul.f32 0.01, %v735_v12  ;;  %v738_v17 = vadd.f32 %v2332_v15, %v2795_v38  ;;  %v729_v18 = vpop.f32.mrb[11].mxu0  ;;  %2393 = vmatprep.mubr.msk.bf16.mxu1 %vm1196_vm6, %v1143_v11  ;;  %vm959_vm11 = vcmp.ge.f32.partialorder %v735_v12, 0.0 }
 0x101   : > { %v1021_v19 = vmul.f32 0.01, %v727_v14  ;;  %v730_v20 = vadd.f32 %v2795_v38, %v729_v18  ;;  %2394 = vmatmul.mubr.msk.bf16.gmra.mrb[4].mxu1 %vm1196_vm6, %v1144_v8  ;;  %vm957_vm12 = vcmp.ge.f32.partialorder %v727_v14, 0.0 }
 0x102   : > { %vm960_vm13 = vcmp.ge.f32.partialorder %v738_v17, 0.0  ;;  %v1024_v21 = vmul.f32 0.01, %v738_v17  ;;  %v1087_v23 = vsel %vm959_vm11, %v735_v12, %v1023_v16 }
 0x103   : > { %vm958_vm14 = vcmp.ge.f32.partialorder %v730_v20, 0.0  ;;  %v1022_v22 = vmul.f32 0.01, %v730_v20  ;;  %v1085_v25 = vsel %vm957_vm12, %v727_v14, %v1021_v19 }
 0x104   : > { %v1088_v24 = vsel %vm960_vm13, %v738_v17, %v1024_v21 }
 0x105   : > { %v1146_v26 = vpack.c.bf16 %v1088_v24, %v1087_v23  ;;  %v1086_v27 = vsel %vm958_vm14, %v730_v20, %v1022_v22  ;;  %v2335_v28 = vpop.f32.mrb[12].mxu0 }
 0x106   : > { %v1145_v29 = vpack.c.bf16 %v1086_v27, %v1085_v25  ;;  %v751_v30 = vadd.f32 %v2335_v28, %v2795_v38  ;;  %v742_v31 = vpop.f32.mrb[13].mxu0 }
 0x107   : > { %v743_v32 = vadd.f32 %v2795_v38, %v742_v31  ;;  %v2336_v33 = vpop.f32.mrb[14].mxu0 }
 0x108   : > { %v1027_v34 = vmul.f32 0.01, %v751_v30  ;;  %v754_v35 = vadd.f32 %v2336_v33, %v2795_v38  ;;  %v745_v36 = vpop.f32.mrb[15].mxu0  ;;  %2397 = vmatprep.mubr.msk.bf16.mxu1 %vm1196_vm6, %v1145_v29  ;;  %vm963_vm15 = vcmp.ge.f32.partialorder %v751_v30, 0.0 }
 0x109   : > { %v1025_v37 = vmul.f32 0.01, %v743_v32  ;;  %v746_v39 = vadd.f32 %v2795_v38, %v745_v36  ;;  %2398 = vmatmul.mubr.msk.bf16.gmra.mrb[8].mxu1 %vm1196_vm6, %v1146_v26  ;;  %vm961_vm0 = vcmp.ge.f32.partialorder %v743_v32, 0.0 }
 0x10a   : > { %vm964_vm1 = vcmp.ge.f32.partialorder %v754_v35, 0.0  ;;  %v1028_v40 = vmul.f32 0.01, %v754_v35  ;;  %v1091_v42 = vsel %vm963_vm15, %v751_v30, %v1027_v34 }
 0x10b   : > { %vm962_vm2 = vcmp.ge.f32.partialorder %v746_v39, 0.0  ;;  %v1026_v41 = vmul.f32 0.01, %v746_v39  ;;  %v1089_v44 = vsel %vm961_vm0, %v743_v32, %v1025_v37 }
 0x10c   : > { %v1092_v43 = vsel %vm964_vm1, %v754_v35, %v1028_v40 }
 0x10d   : > { %v1148_v45 = vpack.c.bf16 %v1092_v43, %v1091_v42  ;;  %v1090_v46 = vsel %vm962_vm2, %v746_v39, %v1026_v41  ;;  %v2339_v47 = vpop.f32.mrb[16].mxu0 }
 0x10e   : > { %v1147_v48 = vpack.c.bf16 %v1090_v46, %v1089_v44  ;;  %v767_v49 = vadd.f32 %v2339_v47, %v2795_v38  ;;  %v758_v50 = vpop.f32.mrb[17].mxu0 }
 0x10f   : > { %v759_v51 = vadd.f32 %v2795_v38, %v758_v50  ;;  %v2340_v52 = vpop.f32.mrb[18].mxu0 }
 0x110   : > { %v1031_v53 = vmul.f32 0.01, %v767_v49  ;;  %v770_v54 = vadd.f32 %v2340_v52, %v2795_v38  ;;  %v761_v55 = vpop.f32.mrb[19].mxu0  ;;  %2401 = vmatprep.mubr.msk.bf16.mxu1 %vm1196_vm6, %v1147_v48  ;;  %vm967_vm3 = vcmp.ge.f32.partialorder %v767_v49, 0.0 }
 0x111   : > { %v1029_v56 = vmul.f32 0.01, %v759_v51  ;;  %v762_v57 = vadd.f32 %v2795_v38, %v761_v55  ;;  %2402 = vmatmul.mubr.msk.bf16.gmra.mrb[12].mxu1 %vm1196_vm6, %v1148_v45  ;;  %vm965_vm4 = vcmp.ge.f32.partialorder %v759_v51, 0.0 }
 0x112   : > { %vm968_vm5 = vcmp.ge.f32.partialorder %v770_v54, 0.0  ;;  %v1032_v58 = vmul.f32 0.01, %v770_v54  ;;  %v1095_v60 = vsel %vm967_vm3, %v767_v49, %v1031_v53 }
 0x113   : > { %vm966_vm7 = vcmp.ge.f32.partialorder %v762_v57, 0.0  ;;  %v1030_v59 = vmul.f32 0.01, %v762_v57  ;;  %v1093_v62 = vsel %vm965_vm4, %v759_v51, %v1029_v56 }
 0x114   : > { %v1096_v61 = vsel %vm968_vm5, %v770_v54, %v1032_v58 }
 0x115   : > { %v1150_v63 = vpack.c.bf16 %v1096_v61, %v1095_v60  ;;  %v1094_v0 = vsel %vm966_vm7, %v762_v57, %v1030_v59  ;;  %v2343_v1 = vpop.f32.mrb[20].mxu0 }
 0x116   : > { %v1149_v2 = vpack.c.bf16 %v1094_v0, %v1093_v62  ;;  %v783_v3 = vadd.f32 %v2343_v1, %v2795_v38  ;;  %v774_v4 = vpop.f32.mrb[21].mxu0 }
 0x117   : > { %v775_v5 = vadd.f32 %v2795_v38, %v774_v4  ;;  %v2344_v6 = vpop.f32.mrb[22].mxu0 }
 0x118   : > { %v1035_v7 = vmul.f32 0.01, %v783_v3  ;;  %v786_v8 = vadd.f32 %v2344_v6, %v2795_v38  ;;  %v777_v9 = vpop.f32.mrb[23].mxu0  ;;  %2405 = vmatprep.mubr.msk.bf16.mxu1 %vm1196_vm6, %v1149_v2  ;;  %vm971_vm8 = vcmp.ge.f32.partialorder %v783_v3, 0.0 }
 0x119   : > { %v1033_v10 = vmul.f32 0.01, %v775_v5  ;;  %v778_v11 = vadd.f32 %v2795_v38, %v777_v9  ;;  %2406 = vmatmul.mubr.msk.bf16.gmra.mrb[16].mxu1 %vm1196_vm6, %v1150_v63  ;;  %vm969_vm9 = vcmp.ge.f32.partialorder %v775_v5, 0.0 }
 0x11a   : > { %vm972_vm10 = vcmp.ge.f32.partialorder %v786_v8, 0.0  ;;  %v1036_v12 = vmul.f32 0.01, %v786_v8  ;;  %v1099_v14 = vsel %vm971_vm8, %v783_v3, %v1035_v7 }
 0x11b   : > { %vm970_vm11 = vcmp.ge.f32.partialorder %v778_v11, 0.0  ;;  %v1034_v13 = vmul.f32 0.01, %v778_v11  ;;  %v1097_v16 = vsel %vm969_vm9, %v775_v5, %v1033_v10 }
 0x11c   : > { %v1100_v15 = vsel %vm972_vm10, %v786_v8, %v1036_v12 }
 0x11d   : > { %v1152_v17 = vpack.c.bf16 %v1100_v15, %v1099_v14  ;;  %v1098_v18 = vsel %vm970_vm11, %v778_v11, %v1034_v13  ;;  %v2347_v19 = vpop.f32.mrb[24].mxu0 }
 0x11e   : > { %v1151_v20 = vpack.c.bf16 %v1098_v18, %v1097_v16  ;;  %v799_v21 = vadd.f32 %v2347_v19, %v2795_v38  ;;  %v790_v22 = vpop.f32.mrb[25].mxu0 }
 0x11f   : > { %v791_v23 = vadd.f32 %v2795_v38, %v790_v22  ;;  %v2348_v24 = vpop.f32.mrb[26].mxu0 }
 0x120   : > { %v1039_v25 = vmul.f32 0.01, %v799_v21  ;;  %v802_v26 = vadd.f32 %v2348_v24, %v2795_v38  ;;  %v793_v27 = vpop.f32.mrb[27].mxu0  ;;  %2409 = vmatprep.mubr.msk.bf16.mxu1 %vm1196_vm6, %v1151_v20  ;;  %vm975_vm12 = vcmp.ge.f32.partialorder %v799_v21, 0.0 }
 0x121   : > { %v1037_v28 = vmul.f32 0.01, %v791_v23  ;;  %v794_v29 = vadd.f32 %v2795_v38, %v793_v27  ;;  %2410 = vmatmul.mubr.msk.bf16.gmra.mrb[20].mxu1 %vm1196_vm6, %v1152_v17  ;;  %vm973_vm13 = vcmp.ge.f32.partialorder %v791_v23, 0.0 }
 0x122   : > { %vm976_vm14 = vcmp.ge.f32.partialorder %v802_v26, 0.0  ;;  %v1040_v30 = vmul.f32 0.01, %v802_v26  ;;  %v1103_v32 = vsel %vm975_vm12, %v799_v21, %v1039_v25 }
 0x123   : > { %vm974_vm15 = vcmp.ge.f32.partialorder %v794_v29, 0.0  ;;  %v1038_v31 = vmul.f32 0.01, %v794_v29  ;;  %v1101_v34 = vsel %vm973_vm13, %v791_v23, %v1037_v28 }
 0x124   : > { %v1104_v33 = vsel %vm976_vm14, %v802_v26, %v1040_v30 }
 0x125   : > { %v1154_v35 = vpack.c.bf16 %v1104_v33, %v1103_v32  ;;  %v1102_v36 = vsel %vm974_vm15, %v794_v29, %v1038_v31  ;;  %v2351_v37 = vpop.f32.mrb[28].mxu0 }
 0x126   : > { %v1153_v39 = vpack.c.bf16 %v1102_v36, %v1101_v34  ;;  %v815_v40 = vadd.f32 %v2351_v37, %v2795_v38  ;;  %v806_v41 = vpop.f32.mrb[29].mxu0 }
 0x127   : > { %v807_v42 = vadd.f32 %v2795_v38, %v806_v41  ;;  %v2352_v43 = vpop.f32.mrb[30].mxu0 }
 0x128   : > { %v1043_v44 = vmul.f32 0.01, %v815_v40  ;;  %v818_v45 = vadd.f32 %v2352_v43, %v2795_v38  ;;  %v809_v46 = vpop.f32.mrb[31].mxu0  ;;  %2413 = vmatprep.mubr.msk.bf16.mxu1 %vm1196_vm6, %v1153_v39  ;;  %vm979_vm0 = vcmp.ge.f32.partialorder %v815_v40, 0.0 }
 0x129   : > { %v1041_v47 = vmul.f32 0.01, %v807_v42  ;;  %v810_v48 = vadd.f32 %v2795_v38, %v809_v46  ;;  %2414 = vmatmul.mubr.msk.bf16.gmra.mrb[24].mxu1 %vm1196_vm6, %v1154_v35  ;;  %vm977_vm1 = vcmp.ge.f32.partialorder %v807_v42, 0.0 }
 0x12a   : > { %vm980_vm2 = vcmp.ge.f32.partialorder %v818_v45, 0.0  ;;  %v1044_v49 = vmul.f32 0.01, %v818_v45  ;;  %v1107_v51 = vsel %vm979_vm0, %v815_v40, %v1043_v44 }
 0x12b   : > { %vm978_vm3 = vcmp.ge.f32.partialorder %v810_v48, 0.0  ;;  %v1042_v50 = vmul.f32 0.01, %v810_v48  ;;  %v1105_v53 = vsel %vm977_vm1, %v807_v42, %v1041_v47 }
 0x12c   : > { %v1108_v52 = vsel %vm980_vm2, %v818_v45, %v1044_v49 }
 0x12d   : > { %v1156_v54 = vpack.c.bf16 %v1108_v52, %v1107_v51  ;;  %v1106_v55 = vsel %vm978_vm3, %v810_v48, %v1042_v50  ;;  %v2355_v56 = vpop.f32.mrb[32].mxu0 }
 0x12e   : > { %v1155_v57 = vpack.c.bf16 %v1106_v55, %v1105_v53  ;;  %v831_v58 = vadd.f32 %v2355_v56, %v2795_v38  ;;  %v822_v59 = vpop.f32.mrb[33].mxu0 }
 0x12f   : > { %v823_v60 = vadd.f32 %v2795_v38, %v822_v59  ;;  %v2356_v61 = vpop.f32.mrb[34].mxu0 }
 0x130   : > { %v1047_v62 = vmul.f32 0.01, %v831_v58  ;;  %v834_v63 = vadd.f32 %v2356_v61, %v2795_v38  ;;  %v825_v0 = vpop.f32.mrb[35].mxu0  ;;  %2417 = vmatprep.mubr.msk.bf16.mxu1 %vm1196_vm6, %v1155_v57  ;;  %vm983_vm4 = vcmp.ge.f32.partialorder %v831_v58, 0.0 }
 0x131   : > { %v1045_v1 = vmul.f32 0.01, %v823_v60  ;;  %v826_v2 = vadd.f32 %v2795_v38, %v825_v0  ;;  %2418 = vmatmul.mubr.msk.bf16.gmra.mrb[28].mxu1 %vm1196_vm6, %v1156_v54  ;;  %vm981_vm5 = vcmp.ge.f32.partialorder %v823_v60, 0.0 }
 0x132   : > { %vm984_vm7 = vcmp.ge.f32.partialorder %v834_v63, 0.0  ;;  %v1048_v3 = vmul.f32 0.01, %v834_v63  ;;  %v1111_v5 = vsel %vm983_vm4, %v831_v58, %v1047_v62 }
 0x133   : > { %vm982_vm8 = vcmp.ge.f32.partialorder %v826_v2, 0.0  ;;  %v1046_v4 = vmul.f32 0.01, %v826_v2  ;;  %v1109_v7 = vsel %vm981_vm5, %v823_v60, %v1045_v1 }
 0x134   : > { %v1112_v6 = vsel %vm984_vm7, %v834_v63, %v1048_v3 }
 0x135   : > { %v1158_v8 = vpack.c.bf16 %v1112_v6, %v1111_v5  ;;  %v1110_v9 = vsel %vm982_vm8, %v826_v2, %v1046_v4  ;;  %v2359_v10 = vpop.f32.mrb[36].mxu0 }
 0x136   : > { %v1157_v11 = vpack.c.bf16 %v1110_v9, %v1109_v7  ;;  %v847_v12 = vadd.f32 %v2359_v10, %v2795_v38  ;;  %v838_v13 = vpop.f32.mrb[37].mxu0 }
 0x137   : > { %v839_v14 = vadd.f32 %v2795_v38, %v838_v13  ;;  %v2360_v15 = vpop.f32.mrb[38].mxu0 }
 0x138   : > { %v1051_v16 = vmul.f32 0.01, %v847_v12  ;;  %v850_v17 = vadd.f32 %v2360_v15, %v2795_v38  ;;  %v841_v18 = vpop.f32.mrb[39].mxu0  ;;  %2421 = vmatprep.mubr.msk.bf16.mxu1 %vm1196_vm6, %v1157_v11  ;;  %vm987_vm9 = vcmp.ge.f32.partialorder %v847_v12, 0.0 }
 0x139   : > { %v1049_v19 = vmul.f32 0.01, %v839_v14  ;;  %v842_v20 = vadd.f32 %v2795_v38, %v841_v18  ;;  %2422 = vmatmul.mubr.msk.bf16.gmra.mrb[32].mxu1 %vm1196_vm6, %v1158_v8  ;;  %vm985_vm10 = vcmp.ge.f32.partialorder %v839_v14, 0.0 }
 0x13a   : > { %vm988_vm11 = vcmp.ge.f32.partialorder %v850_v17, 0.0  ;;  %v1052_v21 = vmul.f32 0.01, %v850_v17  ;;  %v1115_v23 = vsel %vm987_vm9, %v847_v12, %v1051_v16 }
 0x13b   : > { %vm986_vm12 = vcmp.ge.f32.partialorder %v842_v20, 0.0  ;;  %v1050_v22 = vmul.f32 0.01, %v842_v20  ;;  %v1113_v25 = vsel %vm985_vm10, %v839_v14, %v1049_v19 }
 0x13c   : > { %v1116_v24 = vsel %vm988_vm11, %v850_v17, %v1052_v21 }
 0x13d   : > { %v1160_v26 = vpack.c.bf16 %v1116_v24, %v1115_v23  ;;  %v1114_v27 = vsel %vm986_vm12, %v842_v20, %v1050_v22  ;;  %v2363_v28 = vpop.f32.mrb[40].mxu0 }
 0x13e   : > { %v1159_v29 = vpack.c.bf16 %v1114_v27, %v1113_v25  ;;  %v863_v30 = vadd.f32 %v2363_v28, %v2795_v38  ;;  %v854_v31 = vpop.f32.mrb[41].mxu0 }
 0x13f   : > { %v855_v32 = vadd.f32 %v2795_v38, %v854_v31  ;;  %v2364_v33 = vpop.f32.mrb[42].mxu0 }
 0x140   : > { %v1055_v34 = vmul.f32 0.01, %v863_v30  ;;  %v866_v35 = vadd.f32 %v2364_v33, %v2795_v38  ;;  %v857_v36 = vpop.f32.mrb[43].mxu0  ;;  %2425 = vmatprep.mubr.msk.bf16.mxu1 %vm1196_vm6, %v1159_v29  ;;  %vm991_vm13 = vcmp.ge.f32.partialorder %v863_v30, 0.0 }
 0x141   : > { %v1053_v37 = vmul.f32 0.01, %v855_v32  ;;  %v858_v39 = vadd.f32 %v2795_v38, %v857_v36  ;;  %2426 = vmatmul.mubr.msk.bf16.gmra.mrb[36].mxu1 %vm1196_vm6, %v1160_v26  ;;  %vm989_vm14 = vcmp.ge.f32.partialorder %v855_v32, 0.0 }
 0x142   : > { %vm992_vm15 = vcmp.ge.f32.partialorder %v866_v35, 0.0  ;;  %v1056_v40 = vmul.f32 0.01, %v866_v35  ;;  %v1119_v42 = vsel %vm991_vm13, %v863_v30, %v1055_v34 }
 0x143   : > { %vm990_vm0 = vcmp.ge.f32.partialorder %v858_v39, 0.0  ;;  %v1054_v41 = vmul.f32 0.01, %v858_v39  ;;  %v1117_v44 = vsel %vm989_vm14, %v855_v32, %v1053_v37 }
 0x144   : > { %v1120_v43 = vsel %vm992_vm15, %v866_v35, %v1056_v40 }
 0x145   : > { %v1162_v45 = vpack.c.bf16 %v1120_v43, %v1119_v42  ;;  %v1118_v46 = vsel %vm990_vm0, %v858_v39, %v1054_v41  ;;  %v2367_v47 = vpop.f32.mrb[44].mxu0 }
 0x146   : > { %v1161_v48 = vpack.c.bf16 %v1118_v46, %v1117_v44  ;;  %v879_v49 = vadd.f32 %v2367_v47, %v2795_v38  ;;  %v870_v50 = vpop.f32.mrb[45].mxu0 }
 0x147   : > { %v871_v51 = vadd.f32 %v2795_v38, %v870_v50  ;;  %v2368_v52 = vpop.f32.mrb[46].mxu0 }
 0x148   : > { %v1059_v53 = vmul.f32 0.01, %v879_v49  ;;  %v882_v54 = vadd.f32 %v2368_v52, %v2795_v38  ;;  %v873_v55 = vpop.f32.mrb[47].mxu0  ;;  %2429 = vmatprep.mubr.msk.bf16.mxu1 %vm1196_vm6, %v1161_v48  ;;  %vm995_vm1 = vcmp.ge.f32.partialorder %v879_v49, 0.0 }
 0x149   : > { %v1057_v56 = vmul.f32 0.01, %v871_v51  ;;  %v874_v57 = vadd.f32 %v2795_v38, %v873_v55  ;;  %2430 = vmatmul.mubr.msk.bf16.gmra.mrb[40].mxu1 %vm1196_vm6, %v1162_v45  ;;  %vm993_vm2 = vcmp.ge.f32.partialorder %v871_v51, 0.0 }
 0x14a   : > { %vm996_vm3 = vcmp.ge.f32.partialorder %v882_v54, 0.0  ;;  %v1060_v58 = vmul.f32 0.01, %v882_v54  ;;  %v1123_v60 = vsel %vm995_vm1, %v879_v49, %v1059_v53 }
 0x14b   : > { %vm994_vm4 = vcmp.ge.f32.partialorder %v874_v57, 0.0  ;;  %v1058_v59 = vmul.f32 0.01, %v874_v57  ;;  %v1121_v62 = vsel %vm993_vm2, %v871_v51, %v1057_v56 }
 0x14c   : > { %v1124_v61 = vsel %vm996_vm3, %v882_v54, %v1060_v58 }
 0x14d   : > { %v1164_v63 = vpack.c.bf16 %v1124_v61, %v1123_v60  ;;  %v1122_v0 = vsel %vm994_vm4, %v874_v57, %v1058_v59  ;;  %v2371_v1 = vpop.f32.mrb[48].mxu0 }
 0x14e   : > { %v1163_v2 = vpack.c.bf16 %v1122_v0, %v1121_v62  ;;  %v895_v3 = vadd.f32 %v2371_v1, %v2795_v38  ;;  %v886_v4 = vpop.f32.mrb[49].mxu0 }
 0x14f   : > { %v887_v5 = vadd.f32 %v2795_v38, %v886_v4  ;;  %v2372_v6 = vpop.f32.mrb[50].mxu0 }
 0x150   : > { %v1063_v7 = vmul.f32 0.01, %v895_v3  ;;  %v898_v8 = vadd.f32 %v2372_v6, %v2795_v38  ;;  %v889_v9 = vpop.f32.mrb[51].mxu0  ;;  %2433 = vmatprep.mubr.msk.bf16.mxu1 %vm1196_vm6, %v1163_v2  ;;  %vm999_vm5 = vcmp.ge.f32.partialorder %v895_v3, 0.0 }
 0x151   : > { %v1061_v10 = vmul.f32 0.01, %v887_v5  ;;  %v890_v11 = vadd.f32 %v2795_v38, %v889_v9  ;;  %2434 = vmatmul.mubr.msk.bf16.gmra.mrb[44].mxu1 %vm1196_vm6, %v1164_v63  ;;  %vm997_vm7 = vcmp.ge.f32.partialorder %v887_v5, 0.0 }
 0x152   : > { %vm1000_vm8 = vcmp.ge.f32.partialorder %v898_v8, 0.0  ;;  %v1064_v12 = vmul.f32 0.01, %v898_v8  ;;  %v1127_v14 = vsel %vm999_vm5, %v895_v3, %v1063_v7 }
 0x153   : > { %vm998_vm9 = vcmp.ge.f32.partialorder %v890_v11, 0.0  ;;  %v1062_v13 = vmul.f32 0.01, %v890_v11  ;;  %v1125_v16 = vsel %vm997_vm7, %v887_v5, %v1061_v10 }
 0x154   : > { %v1128_v15 = vsel %vm1000_vm8, %v898_v8, %v1064_v12 }
 0x155   : > { %v1166_v17 = vpack.c.bf16 %v1128_v15, %v1127_v14  ;;  %v1126_v18 = vsel %vm998_vm9, %v890_v11, %v1062_v13  ;;  %v2375_v19 = vpop.f32.mrb[52].mxu0  ;;  %v2896_v11 = vld [vmem:[%s3235_s4] ss:$0 sm:$0xff] }
 0x156   : > { %v1165_v20 = vpack.c.bf16 %v1126_v18, %v1125_v16  ;;  %v911_v21 = vadd.f32 %v2375_v19, %v2795_v38  ;;  %v902_v22 = vpop.f32.mrb[53].mxu0 }
 0x157   : > { %v903_v23 = vadd.f32 %v2795_v38, %v902_v22  ;;  %v2376_v24 = vpop.f32.mrb[54].mxu0 }
 0x158   : > { %2437 = vmatprep.mubr.msk.bf16.mxu1 %vm1196_vm6, %v1165_v20  ;;  %vm1003_vm10 = vcmp.ge.f32.partialorder %v911_v21, 0.0  ;;  %v1067_v25 = vmul.f32 0.01, %v911_v21  ;;  %v914_v26 = vadd.f32 %v2376_v24, %v2795_v38  ;;  %v905_v27 = vpop.f32.mrb[55].mxu0 }
 0x159   : > { %2438 = vmatmul.mubr.msk.bf16.gmra.mrb[48].mxu1 %vm1196_vm6, %v1166_v17  ;;  %vm1001_vm11 = vcmp.ge.f32.partialorder %v903_v23, 0.0  ;;  %v1065_v28 = vmul.f32 0.01, %v903_v23  ;;  %v906_v29 = vadd.f32 %v2795_v38, %v905_v27 }
 0x15a   : > { %v1131_v30 = vsel %vm1003_vm10, %v911_v21, %v1067_v25  ;;  %vm1004_vm12 = vcmp.ge.f32.partialorder %v914_v26, 0.0  ;;  %v1068_v31 = vmul.f32 0.01, %v914_v26 }
 0x15b   : > { %v1129_v32 = vsel %vm1001_vm11, %v903_v23, %v1065_v28  ;;  %vm1002_vm13 = vcmp.ge.f32.partialorder %v906_v29, 0.0  ;;  %v1066_v33 = vmul.f32 0.01, %v906_v29 }
 0x15c   : > { %v1132_v34 = vsel %vm1004_vm12, %v914_v26, %v1068_v31 }
 0x15d   : > { %v1168_v35 = vpack.c.bf16 %v1132_v34, %v1131_v30  ;;  %v1130_v36 = vsel %vm1002_vm13, %v906_v29, %v1066_v33  ;;  %v2379_v37 = vpop.f32.mrb[56].mxu0 }
 0x15e   : > { %v1167_v39 = vpack.c.bf16 %v1130_v36, %v1129_v32  ;;  %v927_v40 = vadd.f32 %v2379_v37, %v2795_v38  ;;  %v918_v41 = vpop.f32.mrb[57].mxu0 }
 0x15f   : > { %v919_v42 = vadd.f32 %v2795_v38, %v918_v41  ;;  %v2380_v43 = vpop.f32.mrb[58].mxu0 }
 0x160   : > { %2441 = vmatprep.mubr.msk.bf16.mxu1 %vm1196_vm6, %v1167_v39  ;;  %vm1007_vm14 = vcmp.ge.f32.partialorder %v927_v40, 0.0  ;;  %v1071_v44 = vmul.f32 0.01, %v927_v40  ;;  %v930_v45 = vadd.f32 %v2380_v43, %v2795_v38  ;;  %v921_v46 = vpop.f32.mrb[59].mxu0 }
 0x161   : > { %2442 = vmatmul.mubr.msk.bf16.gmra.mrb[52].mxu1 %vm1196_vm6, %v1168_v35  ;;  %vm1005_vm15 = vcmp.ge.f32.partialorder %v919_v42, 0.0  ;;  %v1069_v47 = vmul.f32 0.01, %v919_v42  ;;  %v922_v48 = vadd.f32 %v2795_v38, %v921_v46 }
 0x162   : > { %v1135_v49 = vsel %vm1007_vm14, %v927_v40, %v1071_v44  ;;  %vm1008_vm0 = vcmp.ge.f32.partialorder %v930_v45, 0.0  ;;  %v1072_v50 = vmul.f32 0.01, %v930_v45 }
 0x163   : > { %v1133_v51 = vsel %vm1005_vm15, %v919_v42, %v1069_v47  ;;  %vm1006_vm1 = vcmp.ge.f32.partialorder %v922_v48, 0.0  ;;  %v1070_v52 = vmul.f32 0.01, %v922_v48 }
 0x164   : > { %v1136_v53 = vsel %vm1008_vm0, %v930_v45, %v1072_v50 }
 0x165   : > { %v1170_v54 = vpack.c.bf16 %v1136_v53, %v1135_v49  ;;  %v1134_v55 = vsel %vm1006_vm1, %v922_v48, %v1070_v52  ;;  %v2383_v56 = vpop.f32.mrb[60].mxu0 }
 0x166   : > { %v1169_v57 = vpack.c.bf16 %v1134_v55, %v1133_v51  ;;  %v943_v58 = vadd.f32 %v2383_v56, %v2795_v38  ;;  %v934_v59 = vpop.f32.mrb[61].mxu0 }
 0x167   : > { %v935_v60 = vadd.f32 %v2795_v38, %v934_v59  ;;  %v2384_v61 = vpop.f32.mrb[62].mxu0 }
 0x168   : > { %2445 = vmatprep.mubr.msk.bf16.mxu1 %vm1196_vm6, %v1169_v57  ;;  %vm1011_vm2 = vcmp.ge.f32.partialorder %v943_v58, 0.0  ;;  %v1075_v62 = vmul.f32 0.01, %v943_v58  ;;  %v946_v63 = vadd.f32 %v2384_v61, %v2795_v38  ;;  %v937_v0 = vpop.f32.mrb[63].mxu0 }
 0x169   : > { %2446 = vmatmul.mubr.msk.bf16.gmra.mrb[56].mxu1 %vm1196_vm6, %v1170_v54  ;;  %vm1009_vm3 = vcmp.ge.f32.partialorder %v935_v60, 0.0  ;;  %v1073_v1 = vmul.f32 0.01, %v935_v60  ;;  %v938_v2 = vadd.f32 %v2795_v38, %v937_v0 }
 0x16a   : > { %v1139_v3 = vsel %vm1011_vm2, %v943_v58, %v1075_v62  ;;  %vm1012_vm4 = vcmp.ge.f32.partialorder %v946_v63, 0.0  ;;  %v1076_v4 = vmul.f32 0.01, %v946_v63 }
 0x16b   : > { %v1137_v5 = vsel %vm1009_vm3, %v935_v60, %v1073_v1  ;;  %vm1010_vm5 = vcmp.ge.f32.partialorder %v938_v2, 0.0  ;;  %v1074_v6 = vmul.f32 0.01, %v938_v2 }
 0x16c   : > { %v1140_v7 = vsel %vm1012_vm4, %v946_v63, %v1076_v4 }
 0x16d   : > { %v1172_v8 = vpack.c.bf16 %v1140_v7, %v1139_v3  ;;  %v1138_v9 = vsel %vm1010_vm5, %v938_v2, %v1074_v6 }
 0x16e   : > { %v1171_v10 = vpack.c.bf16 %v1138_v9, %v1137_v5 }
 0x170   : > { %2449 = vmatprep.mubr.msk.bf16.mxu1 %vm1196_vm6, %v1171_v10 }
 0x171   : > { %2450 = vmatmul.mubr.msk.bf16.gmra.mrb[60].mxu1 %vm1196_vm6, %v1172_v8 }
 0x1cc   : > { %v2391_v38 = vpop.f32.mrb[0].mxu1 }
 0x1cd   : > { %v1336_v12 = vadd.f32 %v2391_v38, %v2896_v11  ;;  %v1327_v13 = vpop.f32.mrb[1].mxu1 }
 0x1ce   : > { %v1328_v14 = vadd.f32 %v2896_v11, %v1327_v13  ;;  %v2392_v15 = vpop.f32.mrb[2].mxu1 }
 0x1cf   : > { %v1648_v16 = vmul.f32 0.01, %v1336_v12  ;;  %v1339_v17 = vadd.f32 %v2392_v15, %v2896_v11  ;;  %v1330_v18 = vpop.f32.mrb[3].mxu1  ;;  %vm1584_vm7 = vcmp.ge.f32.partialorder %v1336_v12, 0.0 }
 0x1d0   : > { %v1646_v19 = vmul.f32 0.01, %v1328_v14  ;;  %v1331_v20 = vadd.f32 %v2896_v11, %v1330_v18  ;;  %vm1582_vm8 = vcmp.ge.f32.partialorder %v1328_v14, 0.0 }
 0x1d1   : > { %vm1585_vm9 = vcmp.ge.f32.partialorder %v1339_v17, 0.0  ;;  %v1649_v21 = vmul.f32 0.01, %v1339_v17  ;;  %v2902_v23 = vsel %vm1584_vm7, %v1336_v12, %v1648_v16 }
 0x1d2   : > { %vm1583_vm10 = vcmp.ge.f32.partialorder %v1331_v20, 0.0  ;;  %v1647_v22 = vmul.f32 0.01, %v1331_v20  ;;  %v2906_v25 = vsel %vm1582_vm8, %v1328_v14, %v1646_v19 }
 0x1d3   : > { %v2904_v24 = vsel %vm1585_vm9, %v1339_v17, %v1649_v21 }
 0x1d4   : > { %v2908_v26 = vsel %vm1583_vm10, %v1331_v20, %v1647_v22  ;;  %v2395_v27 = vpop.f32.mrb[4].mxu1  ;;  %v1775_v28 = vpack.c.bf16 %v2904_v24, %v2902_v23 }
 0x1d5   : > { %v1352_v29 = vadd.f32 %v2395_v27, %v2896_v11  ;;  %v1343_v30 = vpop.f32.mrb[5].mxu1  ;;  %v1774_v31 = vpack.c.bf16 %v2908_v26, %v2906_v25  ;;  %v1998_v26 = vld [vmem:[%s3238_s7] sm:$0xf] }
 0x1d6   : > { %v1344_v32 = vadd.f32 %v2896_v11, %v1343_v30  ;;  %v2396_v33 = vpop.f32.mrb[6].mxu1 }
 0x1d7   : > { %v1652_v34 = vmul.f32 0.01, %v1352_v29  ;;  %v1355_v35 = vadd.f32 %v2396_v33, %v2896_v11  ;;  %v1346_v36 = vpop.f32.mrb[7].mxu1  ;;  %vm1588_vm11 = vcmp.ge.f32.partialorder %v1352_v29, 0.0 }
 0x1d8   : > { %v1650_v37 = vmul.f32 0.01, %v1344_v32  ;;  %v1347_v39 = vadd.f32 %v2896_v11, %v1346_v36  ;;  %vm1586_vm12 = vcmp.ge.f32.partialorder %v1344_v32, 0.0  ;;  %v2969_v36 = vld [vmem:[%s3236_s5] sm:$0x3] }
 0x1d9   : > { %vm1589_vm13 = vcmp.ge.f32.partialorder %v1355_v35, 0.0  ;;  %v1653_v40 = vmul.f32 0.01, %v1355_v35  ;;  %v2918_v42 = vsel %vm1588_vm11, %v1352_v29, %v1652_v34  ;;  %2295 = vmatprep.mubr.msk.bf16.mxu1 %vm1196_vm6, %v2969_v36  ;;  %2313 = vmatprep.mubr.msk.bf16.mxu0 %vm1196_vm6, %v2969_v36 }
 0x1da   : > { %vm1587_vm14 = vcmp.ge.f32.partialorder %v1347_v39, 0.0  ;;  %v1651_v41 = vmul.f32 0.01, %v1347_v39  ;;  %v2922_v44 = vsel %vm1586_vm12, %v1344_v32, %v1650_v37 }
 0x1db   : > { %v2920_v43 = vsel %vm1589_vm13, %v1355_v35, %v1653_v40 }
 0x1dc   : > { %v2924_v45 = vsel %vm1587_vm14, %v1347_v39, %v1651_v41  ;;  %v2399_v46 = vpop.f32.mrb[8].mxu1  ;;  %v1777_v47 = vpack.c.bf16 %v2920_v43, %v2918_v42 }
 0x1dd   : > { %v1368_v48 = vadd.f32 %v2399_v46, %v2896_v11  ;;  %v1359_v49 = vpop.f32.mrb[9].mxu1  ;;  %v1776_v50 = vpack.c.bf16 %v2924_v45, %v2922_v44 }
 0x1de   : > { %v1360_v51 = vadd.f32 %v2896_v11, %v1359_v49  ;;  %v2400_v52 = vpop.f32.mrb[10].mxu1 }
 0x1df   : > { %v1656_v53 = vmul.f32 0.01, %v1368_v48  ;;  %v1371_v54 = vadd.f32 %v2400_v52, %v2896_v11  ;;  %v1362_v55 = vpop.f32.mrb[11].mxu1  ;;  %vm1592_vm15 = vcmp.ge.f32.partialorder %v1368_v48, 0.0 }
 0x1e0   : > { %v1654_v56 = vmul.f32 0.01, %v1360_v51  ;;  %v1363_v57 = vadd.f32 %v2896_v11, %v1362_v55  ;;  %vm1590_vm0 = vcmp.ge.f32.partialorder %v1360_v51, 0.0 }
 0x1e1   : > { %vm1593_vm1 = vcmp.ge.f32.partialorder %v1371_v54, 0.0  ;;  %v1657_v58 = vmul.f32 0.01, %v1371_v54  ;;  %v2934_v60 = vsel %vm1592_vm15, %v1368_v48, %v1656_v53 }
 0x1e2   : > { %vm1591_vm2 = vcmp.ge.f32.partialorder %v1363_v57, 0.0  ;;  %v1655_v59 = vmul.f32 0.01, %v1363_v57  ;;  %v2938_v62 = vsel %vm1590_vm0, %v1360_v51, %v1654_v56 }
 0x1e3   : > { %v2936_v61 = vsel %vm1593_vm1, %v1371_v54, %v1657_v58 }
 0x1e4   : > { %v2940_v63 = vsel %vm1591_vm2, %v1363_v57, %v1655_v59  ;;  %v2403_v0 = vpop.f32.mrb[12].mxu1  ;;  %v1779_v1 = vpack.c.bf16 %v2936_v61, %v2934_v60 }
 0x1e5   : > { %v1384_v2 = vadd.f32 %v2403_v0, %v2896_v11  ;;  %v1375_v3 = vpop.f32.mrb[13].mxu1  ;;  %v1778_v4 = vpack.c.bf16 %v2940_v63, %v2938_v62  ;;  %v1817_v0 = vsel %vm1196_vm6, %v1774_v31, 0 }
 0x1e6   : > { %v1376_v5 = vadd.f32 %v2896_v11, %v1375_v3  ;;  %v2404_v6 = vpop.f32.mrb[14].mxu1 }
 0x1e7   : > { %v1660_v7 = vmul.f32 0.01, %v1384_v2  ;;  %v1387_v8 = vadd.f32 %v2404_v6, %v2896_v11  ;;  %v1378_v9 = vpop.f32.mrb[15].mxu1  ;;  %vm1596_vm3 = vcmp.ge.f32.partialorder %v1384_v2, 0.0  ;;  %v1807_v6 = vld [vmem:[%s3237_s6] sm:$0xf] }
 0x1e8   : > { %v1658_v10 = vmul.f32 0.01, %v1376_v5  ;;  %v1379_v38 = vadd.f32 %v2896_v11, %v1378_v9  ;;  %vm1594_vm4 = vcmp.ge.f32.partialorder %v1376_v5, 0.0 }
 0x1e9   : > { %vm1597_vm5 = vcmp.ge.f32.partialorder %v1387_v8, 0.0  ;;  %v1661_v12 = vmul.f32 0.01, %v1387_v8  ;;  %v2950_v14 = vsel %vm1596_vm3, %v1384_v2, %v1660_v7 }
 0x1ea   : > { %vm1595_vm7 = vcmp.ge.f32.partialorder %v1379_v38, 0.0  ;;  %v1659_v13 = vmul.f32 0.01, %v1379_v38  ;;  %v2954_v16 = vsel %vm1594_vm4, %v1376_v5, %v1658_v10  ;;  %v2612_v5 = vmov 0  }
 0x1eb   : > { %v2952_v15 = vsel %vm1597_vm5, %v1387_v8, %v1661_v12  ;;  %2510 = vset.pattern.permute.xlu0 %v2612_v5 }
 0x1ec   : > { %v2956_v17 = vsel %vm1595_vm7, %v1379_v38, %v1659_v13  ;;  %v2407_v18 = vpop.f32.mrb[16].mxu1  ;;  %v1781_v19 = vpack.c.bf16 %v2952_v15, %v2950_v14  ;;  %1810 = vperm.xlu0 %2510, %v1807_v6  }
 0x1ed   : > { %v1400_v20 = vadd.f32 %v2407_v18, %v2896_v11  ;;  %v1391_v21 = vpop.f32.mrb[17].mxu1  ;;  %v1780_v22 = vpack.c.bf16 %v2956_v17, %v2954_v16 }
 0x1ee   : > { %v1392_v27 = vadd.f32 %v2896_v11, %v1391_v21  ;;  %v2408_v29 = vpop.f32.mrb[18].mxu1 }
 0x1ef   : > { %v1664_v30 = vmul.f32 0.01, %v1400_v20  ;;  %v1403_v32 = vadd.f32 %v2408_v29, %v2896_v11  ;;  %v1394_v33 = vpop.f32.mrb[19].mxu1  ;;  %vm1600_vm8 = vcmp.ge.f32.partialorder %v1400_v20, 0.0 }
 0x1f0   : > { %v1662_v34 = vmul.f32 0.01, %v1392_v27  ;;  %v1395_v35 = vadd.f32 %v2896_v11, %v1394_v33  ;;  %vm1598_vm9 = vcmp.ge.f32.partialorder %v1392_v27, 0.0  ;;  %2001 = vperm.xlu0 %2510, %v1998_v26   ;;  %v1820_v33 = vsel %vm1196_vm6, %v1775_v28, 0 }
 0x1f1   : > { %vm1601_vm10 = vcmp.ge.f32.partialorder %v1403_v32, 0.0  ;;  %v1665_v37 = vmul.f32 0.01, %v1403_v32  ;;  %v1728_v40 = vsel %vm1600_vm8, %v1400_v20, %v1664_v30 }
 0x1f2   : > { %vm1599_vm11 = vcmp.ge.f32.partialorder %v1395_v35, 0.0  ;;  %v1663_v39 = vmul.f32 0.01, %v1395_v35  ;;  %v1726_v46 = vsel %vm1598_vm9, %v1392_v27, %v1662_v34 }
 0x1f3   : > { %v1729_v41 = vsel %vm1601_vm10, %v1403_v32, %v1665_v37 }
 0x1f4   : > { %v1783_v48 = vpack.c.bf16 %v1729_v41, %v1728_v40  ;;  %v1727_v49 = vsel %vm1599_vm11, %v1395_v35, %v1663_v39  ;;  %v2411_v51 = vpop.f32.mrb[20].mxu1 }
 0x1f5   : > { %v1782_v52 = vpack.c.bf16 %v1727_v49, %v1726_v46  ;;  %v1416_v53 = vadd.f32 %v2411_v51, %v2896_v11  ;;  %v1407_v54 = vpop.f32.mrb[21].mxu1 }
 0x1f6   : > { %v1408_v55 = vadd.f32 %v2896_v11, %v1407_v54  ;;  %v2412_v56 = vpop.f32.mrb[22].mxu1 }
 0x1f7   : > { %v1668_v57 = vmul.f32 0.01, %v1416_v53  ;;  %v1419_v58 = vadd.f32 %v2412_v56, %v2896_v11  ;;  %v1410_v59 = vpop.f32.mrb[23].mxu1  ;;  %2454 = vmatprep.subr.msk.bf16.mxu1 %vm1196_vm6, %v1782_v52  ;;  %vm1604_vm12 = vcmp.ge.f32.partialorder %v1416_v53, 0.0 }
 0x1f8   : > { %v1666_v2 = vmul.f32 0.01, %v1408_v55  ;;  %v1411_v3 = vadd.f32 %v2896_v11, %v1410_v59  ;;  %2280 = vmatpush3.bf16.xpose.msra.mxu1 %v1817_v0  ;;  %vm1602_vm13 = vcmp.ge.f32.partialorder %v1408_v55, 0.0 }
 0x1f9   : > { %vm1605_vm14 = vcmp.ge.f32.partialorder %v1419_v58, 0.0  ;;  %v1669_v7 = vmul.f32 0.01, %v1419_v58  ;;  %2455 = vmatprep.subr.msk.bf16.mxu1 %vm1196_vm6, %v1783_v48  ;;  %v1732_v31 = vsel %vm1604_vm12, %v1416_v53, %v1668_v57  ;;  %v1823_v57 = vsel %vm1196_vm6, %v1776_v50, 0 }
 0x1fa   : > { %vm1603_vm15 = vcmp.ge.f32.partialorder %v1411_v3, 0.0  ;;  %v1667_v25 = vmul.f32 0.01, %v1411_v3  ;;  %v1730_v9 = vsel %vm1602_vm13, %v1408_v55, %v1666_v2 }
 0x1fb   : > { %v1733_v8 = vsel %vm1605_vm14, %v1419_v58, %v1669_v7 }
 0x1fc   : > { %v1785_v10 = vpack.c.bf16 %v1733_v8, %v1732_v31  ;;  %v1731_v38 = vsel %vm1603_vm15, %v1411_v3, %v1667_v25  ;;  %v2415_v12 = vpop.f32.mrb[24].mxu1 }
 0x1fd   : > { %v1784_v13 = vpack.c.bf16 %v1731_v38, %v1730_v9  ;;  %v1432_v18 = vadd.f32 %v2415_v12, %v2896_v11  ;;  %v1423_v20 = vpop.f32.mrb[25].mxu1  ;;  %v1826_v12 = vsel %vm1196_vm6, %v1777_v47, 0 }
 0x1fe   : > { %v1424_v21 = vadd.f32 %v2896_v11, %v1423_v20  ;;  %v2416_v27 = vpop.f32.mrb[26].mxu1 }
 0x1ff   : > { %v1672_v29 = vmul.f32 0.01, %v1432_v18  ;;  %v1435_v30 = vadd.f32 %v2416_v27, %v2896_v11  ;;  %v1426_v32 = vpop.f32.mrb[27].mxu1  ;;  %vm1608_vm0 = vcmp.ge.f32.partialorder %v1432_v18, 0.0 }
 0x200   : > { %v1670_v34 = vmul.f32 0.01, %v1424_v21  ;;  %v1427_v35 = vadd.f32 %v2896_v11, %v1426_v32  ;;  %2282 = vmatpush3.bf16.xpose.msra.mxu1 %v1820_v33  ;;  %vm1606_vm1 = vcmp.ge.f32.partialorder %v1424_v21, 0.0 }
 0x201   : > { %vm1609_vm2 = vcmp.ge.f32.partialorder %v1435_v30, 0.0  ;;  %v1673_v37 = vmul.f32 0.01, %v1435_v30  ;;  %2456 = vmatprep.subr.msk.bf16.mxu1 %vm1196_vm6, %v1784_v13  ;;  %v3000_v40 = vsel %vm1608_vm0, %v1432_v18, %v1672_v29 }
 0x202   : > { %vm1607_vm3 = vcmp.ge.f32.partialorder %v1427_v35, 0.0  ;;  %v1671_v39 = vmul.f32 0.01, %v1427_v35  ;;  %v1734_v46 = vsel %vm1606_vm1, %v1424_v21, %v1670_v34 }
 0x203   : > { %v3002_v41 = vsel %vm1609_vm2, %v1435_v30, %v1673_v37 }
 0x204   : > { %v1787_v23 = vpack.c.bf16 %v3002_v41, %v3000_v40  ;;  %v1735_v24 = vsel %vm1607_vm3, %v1427_v35, %v1671_v39  ;;  %v2419_v28 = vpop.f32.mrb[28].mxu1 }
 0x205   : > { %v1786_v48 = vpack.c.bf16 %v1735_v24, %v1734_v46  ;;  %v1448_v49 = vadd.f32 %v2419_v28, %v2896_v11  ;;  %v1439_v51 = vpop.f32.mrb[29].mxu1  ;;  %v1829_v28 = vsel %vm1196_vm6, %v1778_v4, 0 }
 0x206   : > { %v1440_v52 = vadd.f32 %v2896_v11, %v1439_v51  ;;  %v2420_v53 = vpop.f32.mrb[30].mxu1 }
 0x207   : > { %v1676_v54 = vmul.f32 0.01, %v1448_v49  ;;  %v1451_v55 = vadd.f32 %v2420_v53, %v2896_v11  ;;  %v1442_v56 = vpop.f32.mrb[31].mxu1  ;;  %vm1612_vm4 = vcmp.ge.f32.partialorder %v1448_v49, 0.0 }
 0x208   : > { %v1674_v58 = vmul.f32 0.01, %v1440_v52  ;;  %v1443_v59 = vadd.f32 %v2896_v11, %v1442_v56  ;;  %2284 = vmatpush3.bf16.xpose.msra.mxu1 %v1823_v57  ;;  %vm1610_vm5 = vcmp.ge.f32.partialorder %v1440_v52, 0.0 }
 0x209   : > { %vm1613_vm7 = vcmp.ge.f32.partialorder %v1451_v55, 0.0  ;;  %v1677_v0 = vmul.f32 0.01, %v1451_v55  ;;  %2457 = vmatprep.subr.msk.bf16.mxu1 %vm1196_vm6, %v1785_v10  ;;  %v3015_v3 = vsel %vm1612_vm4, %v1448_v49, %v1676_v54 }
 0x20a   : > { %vm1611_vm8 = vcmp.ge.f32.partialorder %v1443_v59, 0.0  ;;  %v1675_v2 = vmul.f32 0.01, %v1443_v59  ;;  %v3019_v6 = vsel %vm1610_vm5, %v1440_v52, %v1674_v58 }
 0x20b   : > { %v3017_v5 = vsel %vm1613_vm7, %v1451_v55, %v1677_v0 }
 0x20c   : > { %v1789_v44 = vpack.c.bf16 %v3017_v5, %v3015_v3  ;;  %v3023_v45 = vsel %vm1611_vm8, %v1443_v59, %v1675_v2  ;;  %v2423_v50 = vpop.f32.mrb[32].mxu1  ;;  %v1832_v2 = vsel %vm1196_vm6, %v1779_v1, 0 }
 0x20d   : > { %v1788_v7 = vpack.c.bf16 %v3023_v45, %v3019_v6  ;;  %v1464_v25 = vadd.f32 %v2423_v50, %v2896_v11  ;;  %v1455_v26 = vpop.f32.mrb[33].mxu1 }
 0x20e   : > { %v1456_v31 = vadd.f32 %v2896_v11, %v1455_v26  ;;  %v2424_v8 = vpop.f32.mrb[34].mxu1 }
 0x20f   : > { %v1680_v9 = vmul.f32 0.01, %v1464_v25  ;;  %v1467_v10 = vadd.f32 %v2424_v8, %v2896_v11  ;;  %v1458_v38 = vpop.f32.mrb[35].mxu1  ;;  %vm1616_vm9 = vcmp.ge.f32.partialorder %v1464_v25, 0.0 }
 0x210   : > { %v1678_v13 = vmul.f32 0.01, %v1456_v31  ;;  %v1459_v18 = vadd.f32 %v2896_v11, %v1458_v38  ;;  %2286 = vmatpush3.bf16.xpose.msra.mxu1 %v1826_v12  ;;  %vm1614_vm10 = vcmp.ge.f32.partialorder %v1456_v31, 0.0 }
 0x211   : > { %vm1617_vm11 = vcmp.ge.f32.partialorder %v1467_v10, 0.0  ;;  %v1681_v20 = vmul.f32 0.01, %v1467_v10  ;;  %2458 = vmatprep.subr.msk.bf16.mxu1 %vm1196_vm6, %v1786_v48  ;;  %v3036_v27 = vsel %vm1616_vm9, %v1464_v25, %v1680_v9 }
 0x212   : > { %vm1615_vm12 = vcmp.ge.f32.partialorder %v1459_v18, 0.0  ;;  %v1679_v21 = vmul.f32 0.01, %v1459_v18  ;;  %v3040_v30 = vsel %vm1614_vm10, %v1456_v31, %v1678_v13 }
 0x213   : > { %v3038_v29 = vsel %vm1617_vm11, %v1467_v10, %v1681_v20 }
 0x214   : > { %v3042_v42 = vsel %vm1615_vm12, %v1459_v18, %v1679_v21  ;;  %v2427_v43 = vpop.f32.mrb[36].mxu1  ;;  %v1791_v47 = vpack.c.bf16 %v3038_v29, %v3036_v27  ;;  %v1835_v21 = vsel %vm1196_vm6, %v1780_v22, 0 }
 0x215   : > { %v1480_v32 = vadd.f32 %v2427_v43, %v2896_v11  ;;  %v1471_v33 = vpop.f32.mrb[37].mxu1  ;;  %v1790_v34 = vpack.c.bf16 %v3042_v42, %v3040_v30 }
 0x216   : > { %v1472_v35 = vadd.f32 %v2896_v11, %v1471_v33  ;;  %v2428_v37 = vpop.f32.mrb[38].mxu1 }
 0x217   : > { %v1684_v39 = vmul.f32 0.01, %v1480_v32  ;;  %v1483_v46 = vadd.f32 %v2428_v37, %v2896_v11  ;;  %v1474_v24 = vpop.f32.mrb[39].mxu1  ;;  %vm1620_vm13 = vcmp.ge.f32.partialorder %v1480_v32, 0.0 }
 0x218   : > { %v1682_v48 = vmul.f32 0.01, %v1472_v35  ;;  %v1475_v49 = vadd.f32 %v2896_v11, %v1474_v24  ;;  %2288 = vmatpush3.bf16.xpose.msra.mxu1 %v1829_v28  ;;  %vm1618_vm14 = vcmp.ge.f32.partialorder %v1472_v35, 0.0 }
 0x219   : > { %vm1621_vm15 = vcmp.ge.f32.partialorder %v1483_v46, 0.0  ;;  %v1685_v51 = vmul.f32 0.01, %v1483_v46  ;;  %2459 = vmatprep.subr.msk.bf16.mxu1 %vm1196_vm6, %v1787_v23  ;;  %v3060_v53 = vsel %vm1620_vm13, %v1480_v32, %v1684_v39 }
 0x21a   : > { %vm1619_vm0 = vcmp.ge.f32.partialorder %v1475_v49, 0.0  ;;  %v1683_v52 = vmul.f32 0.01, %v1475_v49  ;;  %v3064_v63 = vsel %vm1618_vm14, %v1472_v35, %v1682_v48 }
 0x21b   : > { %v3062_v62 = vsel %vm1621_vm15, %v1483_v46, %v1685_v51 }
 0x21c   : > { %v3066_v4 = vsel %vm1619_vm0, %v1475_v49, %v1683_v52  ;;  %v2431_v54 = vpop.f32.mrb[40].mxu1  ;;  %v1793_v55 = vpack.c.bf16 %v3062_v62, %v3060_v53  ;;  %v1838_v52 = vsel %vm1196_vm6, %v1781_v19, 0 }
 0x21d   : > { %v1496_v56 = vadd.f32 %v2431_v54, %v2896_v11  ;;  %v1487_v57 = vpop.f32.mrb[41].mxu1  ;;  %v1792_v40 = vpack.c.bf16 %v3066_v4, %v3064_v63 }
 0x21e   : > { %v1488_v41 = vadd.f32 %v2896_v11, %v1487_v57  ;;  %v2432_v23 = vpop.f32.mrb[42].mxu1 }
 0x21f   : > { %v1688_v58 = vmul.f32 0.01, %v1496_v56  ;;  %v1499_v59 = vadd.f32 %v2432_v23, %v2896_v11  ;;  %v1490_v0 = vpop.f32.mrb[43].mxu1  ;;  %vm1624_vm1 = vcmp.ge.f32.partialorder %v1496_v56, 0.0 }
 0x220   : > { %v1686_v50 = vmul.f32 0.01, %v1488_v41  ;;  %v1491_v25 = vadd.f32 %v2896_v11, %v1490_v0  ;;  %2290 = vmatpush3.bf16.xpose.msra.mxu1 %v1832_v2  ;;  %vm1622_vm2 = vcmp.ge.f32.partialorder %v1488_v41, 0.0 }
 0x221   : > { %vm1625_vm3 = vcmp.ge.f32.partialorder %v1499_v59, 0.0  ;;  %v1689_v26 = vmul.f32 0.01, %v1499_v59  ;;  %2460 = vmatprep.subr.msk.bf16.mxu1 %vm1196_vm6, %v1788_v7  ;;  %v3084_v8 = vsel %vm1624_vm1, %v1496_v56, %v1688_v58 }
 0x222   : > { %vm1623_vm4 = vcmp.ge.f32.partialorder %v1491_v25, 0.0  ;;  %v1687_v31 = vmul.f32 0.01, %v1491_v25  ;;  %v3088_v61 = vsel %vm1622_vm2, %v1488_v41, %v1686_v50 }
 0x223   : > { %v3086_v60 = vsel %vm1625_vm3, %v1499_v59, %v1689_v26 }
 0x224   : > { %v3090_v1 = vsel %vm1623_vm4, %v1491_v25, %v1687_v31  ;;  %v2435_v9 = vpop.f32.mrb[44].mxu1  ;;  %v1795_v10 = vpack.c.bf16 %v3086_v60, %v3084_v8  ;;  %v1865_v31 = vsel %vm1196_vm6, %v1790_v34, 0 }
 0x225   : > { %v1512_v38 = vadd.f32 %v2435_v9, %v2896_v11  ;;  %v1503_v12 = vpop.f32.mrb[45].mxu1  ;;  %v1794_v6 = vpack.c.bf16 %v3090_v1, %v3088_v61 }
 0x226   : > { %v1504_v45 = vadd.f32 %v2896_v11, %v1503_v12  ;;  %v2436_v7 = vpop.f32.mrb[46].mxu1 }
 0x227   : > { %v1692_v13 = vmul.f32 0.01, %v1512_v38  ;;  %v1515_v18 = vadd.f32 %v2436_v7, %v2896_v11  ;;  %v1506_v20 = vpop.f32.mrb[47].mxu1  ;;  %vm1628_vm5 = vcmp.ge.f32.partialorder %v1512_v38, 0.0 }
 0x228   : > { %v1690_v43 = vmul.f32 0.01, %v1504_v45  ;;  %v1507_v32 = vadd.f32 %v2896_v11, %v1506_v20  ;;  %2292 = vmatpush3.bf16.xpose.msra.mxu1 %v1835_v21  ;;  %vm1626_vm7 = vcmp.ge.f32.partialorder %v1504_v45, 0.0 }
 0x229   : > { %vm1629_vm8 = vcmp.ge.f32.partialorder %v1515_v18, 0.0  ;;  %v1693_v33 = vmul.f32 0.01, %v1515_v18  ;;  %2461 = vmatprep.subr.msk.bf16.mxu1 %vm1196_vm6, %v1789_v44  ;;  %v3108_v37 = vsel %vm1628_vm5, %v1512_v38, %v1692_v13 }
 0x22a   : > { %vm1627_vm9 = vcmp.ge.f32.partialorder %v1507_v32, 0.0  ;;  %v1691_v35 = vmul.f32 0.01, %v1507_v32  ;;  %v3112_v17 = vsel %vm1626_vm7, %v1504_v45, %v1690_v43 }
 0x22b   : > { %v3110_v16 = vsel %vm1629_vm8, %v1515_v18, %v1693_v33 }
 0x22c   : > { %v3114_v22 = vsel %vm1627_vm9, %v1507_v32, %v1691_v35  ;;  %v2439_v39 = vpop.f32.mrb[48].mxu1  ;;  %v1797_v46 = vpack.c.bf16 %v3110_v16, %v3108_v37 }
 0x22d   : > { %v1528_v24 = vadd.f32 %v2439_v39, %v2896_v11  ;;  %v1519_v28 = vpop.f32.mrb[49].mxu1  ;;  %v1796_v3 = vpack.c.bf16 %v3114_v22, %v3112_v17 }
 0x22e   : > { %v1520_v5 = vadd.f32 %v2896_v11, %v1519_v28  ;;  %v2440_v44 = vpop.f32.mrb[50].mxu1  ;;  %v1868_v28 = vsel %vm1196_vm6, %v1791_v47, 0  ;;  %v1886_v62 = vsel %vm1196_vm6, %v1797_v46, 0 }
 0x22f   : > { %v1696_v48 = vmul.f32 0.01, %v1528_v24  ;;  %v1531_v49 = vadd.f32 %v2440_v44, %v2896_v11  ;;  %v1522_v51 = vpop.f32.mrb[51].mxu1  ;;  %vm1632_vm10 = vcmp.ge.f32.partialorder %v1528_v24, 0.0  ;;  %v1883_v53 = vsel %vm1196_vm6, %v1796_v3, 0 }
 0x230   : > { %v1694_v54 = vmul.f32 0.01, %v1520_v5  ;;  %v1523_v56 = vadd.f32 %v2896_v11, %v1522_v51  ;;  %2294 = vmatpush3.bf16.xpose.msra.mxu1 %v1838_v52  ;;  %vm1630_vm11 = vcmp.ge.f32.partialorder %v1520_v5, 0.0 }
 0x231   : > { %vm1633_vm12 = vcmp.ge.f32.partialorder %v1531_v49, 0.0  ;;  %v1697_v57 = vmul.f32 0.01, %v1531_v49  ;;  %v1760_v23 = vsel %vm1632_vm10, %v1528_v24, %v1696_v48 }
 0x232   : > { %vm1631_vm13 = vcmp.ge.f32.partialorder %v1523_v56, 0.0  ;;  %v1695_v41 = vmul.f32 0.01, %v1523_v56  ;;  %v1758_v59 = vsel %vm1630_vm11, %v1520_v5, %v1694_v54 }
 0x233   : > { %v1761_v58 = vsel %vm1633_vm12, %v1531_v49, %v1697_v57 }
 0x234   : > { %v1799_v0 = vpack.c.bf16 %v1761_v58, %v1760_v23  ;;  %v1759_v2 = vsel %vm1631_vm13, %v1523_v56, %v1695_v41  ;;  %v2443_v50 = vpop.f32.mrb[52].mxu1 }
 0x235   : > { %v1798_v25 = vpack.c.bf16 %v1759_v2, %v1758_v59  ;;  %v1544_v14 = vadd.f32 %v2443_v50, %v2896_v11  ;;  %v1535_v15 = vpop.f32.mrb[53].mxu1  ;;  %v1871_v50 = vsel %vm1196_vm6, %v1792_v40, 0 }
 0x236   : > { %v1536_v19 = vadd.f32 %v2896_v11, %v1535_v15  ;;  %v2444_v26 = vpop.f32.mrb[54].mxu1 }
 0x237   : > { %2462 = vmatprep.subr.msk.bf16.mxu0 %vm1196_vm6, %v1798_v25  ;;  %v1700_v9 = vmul.f32 0.01, %v1544_v14  ;;  %v1547_v38 = vadd.f32 %v2444_v26, %v2896_v11  ;;  %v1538_v12 = vpop.f32.mrb[55].mxu1  ;;  %2296 = vmatmul.mubr.msk.bf16.vlgmr.msra.gmra.mrb[64].mxu1 %vm1196_vm6, %v2969_v36  ;;  %vm1636_vm14 = vcmp.ge.f32.partialorder %v1544_v14, 0.0 }
 0x238   : > { %2298 = vmatpush3.bf16.xpose.msra.mxu0 %v1865_v31  ;;  %v1698_v45 = vmul.f32 0.01, %v1536_v19  ;;  %v1539_v7 = vadd.f32 %v2896_v11, %v1538_v12  ;;  %vm1634_vm15 = vcmp.ge.f32.partialorder %v1536_v19, 0.0 }
 0x239   : > { %2463 = vmatprep.subr.msk.bf16.mxu0 %vm1196_vm6, %v1799_v0  ;;  %vm1637_vm0 = vcmp.ge.f32.partialorder %v1547_v38, 0.0  ;;  %v1701_v13 = vmul.f32 0.01, %v1547_v38  ;;  %v1764_v42 = vsel %vm1636_vm14, %v1544_v14, %v1700_v9 }
 0x23a   : > { %vm1635_vm1 = vcmp.ge.f32.partialorder %v1539_v7, 0.0  ;;  %v1699_v30 = vmul.f32 0.01, %v1539_v7  ;;  %v1762_v18 = vsel %vm1634_vm15, %v1536_v19, %v1698_v45 }
 0x23b   : > { %v1765_v34 = vsel %vm1637_vm0, %v1547_v38, %v1701_v13  ;;  %v1880_v13 = vsel %vm1196_vm6, %v1795_v10, 0 }
 0x23c   : > { %v1801_v20 = vpack.c.bf16 %v1765_v34, %v1764_v42  ;;  %v1763_v21 = vsel %vm1635_vm1, %v1539_v7, %v1699_v30  ;;  %v2447_v43 = vpop.f32.mrb[56].mxu1  ;;  %v1874_v7 = vsel %vm1196_vm6, %v1793_v55, 0 }
 0x23d   : > { %v1800_v32 = vpack.c.bf16 %v1763_v21, %v1762_v18  ;;  %v1560_v33 = vadd.f32 %v2447_v43, %v2896_v11  ;;  %v1551_v35 = vpop.f32.mrb[57].mxu1 }
 0x23e   : > { %v1552_v39 = vadd.f32 %v2896_v11, %v1551_v35  ;;  %v2448_v24 = vpop.f32.mrb[58].mxu1 }
 0x23f   : > { %vm1640_vm2 = vcmp.ge.f32.partialorder %v1560_v33, 0.0  ;;  %v1704_v5 = vmul.f32 0.01, %v1560_v33  ;;  %v1563_v44 = vadd.f32 %v2448_v24, %v2896_v11  ;;  %v1554_v48 = vpop.f32.mrb[59].mxu1 }
 0x240   : > { %2300 = vmatpush3.bf16.xpose.msra.mxu0 %v1868_v28  ;;  %vm1638_vm3 = vcmp.ge.f32.partialorder %v1552_v39, 0.0  ;;  %v1702_v49 = vmul.f32 0.01, %v1552_v39  ;;  %v1555_v51 = vadd.f32 %v2896_v11, %v1554_v48 }
 0x241   : > { %2464 = vmatprep.subr.msk.bf16.mxu0 %vm1196_vm6, %v1800_v32  ;;  %v1768_v52 = vsel %vm1640_vm2, %v1560_v33, %v1704_v5  ;;  %vm1641_vm4 = vcmp.ge.f32.partialorder %v1563_v44, 0.0  ;;  %v1705_v54 = vmul.f32 0.01, %v1563_v44 }
 0x242   : > { %v1766_v56 = vsel %vm1638_vm3, %v1552_v39, %v1702_v49  ;;  %vm1639_vm5 = vcmp.ge.f32.partialorder %v1555_v51, 0.0  ;;  %v1703_v27 = vmul.f32 0.01, %v1555_v51 }
 0x243   : > { %v1769_v29 = vsel %vm1641_vm4, %v1563_v44, %v1705_v54 }
 0x244   : > { %v1803_v47 = vpack.c.bf16 %v1769_v29, %v1768_v52  ;;  %v1767_v57 = vsel %vm1639_vm5, %v1555_v51, %v1703_v27  ;;  %v2451_v41 = vpop.f32.mrb[60].mxu1 }
 0x245   : > { %v1802_v23 = vpack.c.bf16 %v1767_v57, %v1766_v56  ;;  %v1576_v58 = vadd.f32 %v2451_v41, %v2896_v11  ;;  %v1567_v59 = vpop.f32.mrb[61].mxu1 }
 0x246   : > { %v1568_v0 = vadd.f32 %v2896_v11, %v1567_v59  ;;  %v2452_v2 = vpop.f32.mrb[62].mxu1 }
 0x247   : > { %vm1644_vm7 = vcmp.ge.f32.partialorder %v1576_v58, 0.0  ;;  %v1708_v25 = vmul.f32 0.01, %v1576_v58  ;;  %v1579_v14 = vadd.f32 %v2452_v2, %v2896_v11  ;;  %v1570_v15 = vpop.f32.mrb[63].mxu1 }
 0x248   : > { %2302 = vmatpush3.bf16.xpose.msra.mxu0 %v1871_v50  ;;  %vm1642_vm8 = vcmp.ge.f32.partialorder %v1568_v0, 0.0  ;;  %v1706_v19 = vmul.f32 0.01, %v1568_v0  ;;  %v1571_v26 = vadd.f32 %v2896_v11, %v1570_v15  ;;  %v1877_v11 = vsel %vm1196_vm6, %v1794_v6, 0 }
 0x249   : > { %2465 = vmatprep.subr.msk.bf16.mxu0 %vm1196_vm6, %v1801_v20  ;;  %v1772_v31 = vsel %vm1644_vm7, %v1576_v58, %v1708_v25  ;;  %vm1645_vm9 = vcmp.ge.f32.partialorder %v1579_v14, 0.0  ;;  %v1709_v9 = vmul.f32 0.01, %v1579_v14 }
 0x24a   : > { %v1770_v38 = vsel %vm1642_vm8, %v1568_v0, %v1706_v19  ;;  %vm1643_vm10 = vcmp.ge.f32.partialorder %v1571_v26, 0.0  ;;  %v1707_v63 = vmul.f32 0.01, %v1571_v26 }
 0x24b   : > { %v1773_v4 = vsel %vm1645_vm9, %v1579_v14, %v1709_v9 }
 0x24c   : > { %v1805_v40 = vpack.c.bf16 %v1773_v4, %v1772_v31  ;;  %v1771_v12 = vsel %vm1643_vm10, %v1571_v26, %v1707_v63 }
 0x24d   : > { %v1804_v45 = vpack.c.bf16 %v1771_v12, %v1770_v38 }
 0x250   : > { %2304 = vmatpush3.bf16.xpose.msra.mxu0 %v1874_v7 }
 0x251   : > { %2466 = vmatprep.subr.msk.bf16.mxu0 %vm1196_vm6, %v1802_v23 }
 0x258   : > { %2306 = vmatpush3.bf16.xpose.msra.mxu0 %v1877_v11 }
 0x259   : > { %2467 = vmatprep.subr.msk.bf16.mxu0 %vm1196_vm6, %v1803_v47 }
 0x260   : > { %2308 = vmatpush3.bf16.xpose.msra.mxu0 %v1880_v13 }
 0x261   : > { %2468 = vmatprep.subr.msk.bf16.mxu0 %vm1196_vm6, %v1804_v45 }
 0x268   : > { %2310 = vmatpush3.bf16.xpose.msra.mxu0 %v1883_v53 }
 0x269   : > { %2469 = vmatprep.subr.msk.bf16.mxu0 %vm1196_vm6, %v1805_v40 }
 0x26b   : > { %v1811_v55 = vpop.permute.xlu0 %1810 }
 0x26f   : > { %v2002_v6 = vpop.permute.xlu0 %2001 }
 0x270   : > { %2312 = vmatpush3.bf16.xpose.msra.mxu0 %v1886_v62 }
 0x277   : > { %2314 = vmatmul.mubr.msk.bf16.vlgmr.msra.gmra.mrb[64].mxu0 %vm1196_vm6, %v2969_v36 }
 0x30a   : > { %v1946_v8 = vpop.f32.mrb[64].mxu1 }
 0x30b   : > { %v1947_v60 = vadd.f32 %v1946_v8, %v1811_v55  ;;  %v1948_v61 = vpop.f32.mrb[65].mxu1 }
 0x30c   : > { %v1949_v1 = vadd.f32 %v1948_v61, %v1811_v55  ;;  %v1950_v10 = vpop.f32.mrb[66].mxu1 }
 0x30d   : > { %v1951_v17 = vpop.f32.mrb[67].mxu1  ;;  %v1994_v22 = vmax.f32 %v1947_v60, 0.0 }
 0x30e   : > { %v1995_v3 = vmax.f32 %v1949_v1, 0.0 }
 0x30f   : > { %v2004_v37 = vadd.f32 %v2002_v6, %v1994_v22 }
 0x310   : > { %v2005_v16 = vadd.f32 %v2002_v6, %v1995_v3 }
 0x312   : > { %v2012_v46 = vcombine.low %v2004_v37, %v2005_v16 }
 0x314   : > { %2016 = vst [vmem:[%s299_s18] sm:$0xff] %v2012_v46 }
 0x34a   : > { %v1987_v30 = vpop.f32.mrb[64].mxu0 }
 0x34b   : > { %v1988_v36 = vadd.f32 %v1987_v30, %v1811_v55  ;;  %v1989_v42 = vpop.f32.mrb[65].mxu0 }
 0x34c   : > { %v1990_v34 = vadd.f32 %v1989_v42, %v1811_v55  ;;  %v1991_v18 = vpop.f32.mrb[66].mxu0 }
 0x34d   : > { %v1992_v20 = vpop.f32.mrb[67].mxu0  ;;  %v1996_v21 = vmax.f32 %v1988_v36, 0.0 }
 0x34e   : > { %v1997_v43 = vmax.f32 %v1990_v34, 0.0 }
 0x34f   : > { %v2006_v32 = vadd.f32 %v2002_v6, %v1996_v21 }
 0x350   : > { %v2007_v33 = vadd.f32 %v2002_v6, %v1997_v43 }
 0x352   : > { %v2013_v35 = vcombine.low %v2006_v32, %v2007_v33 }
 0x354   : > { %2017 = vst [vmem:[%s299_s18 + $0x8] sm:$0xff] %v2013_v35 }
 0x355   : > { %2561 = shalt.err (!%p2558_p3)
}
 0x356   : > { %s2562_s12 = scalar_lea.hbm %s3189_s23, 256  ;;  %s2566_s18 = scalar_lea.hbm %s3239_s8, 512 }
 0x357   : > { %p2563_p4 = scmp.ne.s32.totalorder %s3189_s23, %s2562_s12  ;;  %p2567_p9 = scmp.lt.u32.totalorder %s3189_s23, %s3239_s8 }
 0x358   : > { %p2568_p10 = scmp.lt.u32.totalorder %s2566_s18, %s2562_s12  ;;  %p2570_p12 = scmp.lt.u32.totalorder %s2562_s12, %s3189_s23 }
 0x359   : > { %p2564_p7 = pnand %p2563_p4, %p2697_p5 }
 0x35a   : > { %p2569_p11 = por %p2568_p10, %p2567_p9 }
 0x35b   : > { %p2565_p8 = pneg %p2564_p7 }
 0x35c   : > { %p2571_p13 = por %p2570_p12, %p2569_p11 }
 0x35e   : > { %p2572_p0 = pnand %p2571_p13, %p2565_p8 }
 0x360   : > { %2575 = shalt.err (!%p2572_p0)
}
 0x361   : > { %2470 = dma.vmem_to_hbm [thread:$0]  (%p2697_p5), %s3191_s20, 256, %s3189_s23, %s2019_s24  }
 0x362 PF: > { %p2476_p1 = scmp.ge.s32.totalorder %s2610_s30, 2  ;;  %s2045_s22 = sand.u32 1, %s2598_s27  }
 0x363   : > { %s2046_s25 = scalar_lea.sflag [#allocation3], %s2045_s22 }
 0x364   : > { %p2473_p2 = pnand %p2476_p1, %p2701_p6 }
 0x366   : > { %2593 = dma.done.wait (!%p2473_p2), %s2046_s25, 256  }
 0x367   : > { %2595 = vsyncadd (!%p2473_p2), %s2046_s25, 4294967040  ;;  %p18_p3 = scmp.ge.s32.totalorder %s2684_s11, 4   ;;  %s3242_s27 = smov %s2602_s28 }
 0x368   : > { %s3243_s28 = smov %s2606_s29  ;;  %s3244_s29 = smov %s2695_s14 }
 0x369   : > { %s3245_s30 = smov %s2684_s11  ;;  %20 = sbr.rel (!%p18_p3) target bundleno = 3 (0x3), region = 87 }
 0x370   :  { %2051 = vsyncpa [#allocation3], 1 }
 0x371   :  { %2053 = vsyncpa [#allocation3 + $0x1], 1 }

</bundles_post_ra>
